<compile_context>
chip_gen: v7x
topology: tpu7x:2x2x1
jax: 0.10.0
libtpu: 0.0.40
codegen_flags: <defaults>
</compile_context>

<pallas_src>
import functools

import jax
import jax.numpy as jnp
import numpy as np
from jax import lax
from jax.experimental import pallas as pl
from jax.experimental.pallas import tpu as pltpu

BN_EPS = 1e-5
_MXU_MIN_CHANNELS = 8   # use the MXU (bf16) 1x1 path whenever C >= 8
_MAX_BATCH_TILE = 8     # samples per grid step (amortizes per-step overhead)


# ----------------------------------------------------------------------------
# Pallas kernel: TB batch samples per grid step, whole branch + fused shuffle.
# ----------------------------------------------------------------------------
def _block_kernel(dil, H, W, C, TB, use_mxu,
                  x_ref, w1_ref, b1_ref, wdw_ref, bdw_ref, w3_ref, b3_ref,
                  o_ref):
    """x_ref : (TB, 2, C, L)  input, group 0 = x1, group 1 = x2, L = H*W lanes
       w1/w3 : (C, C)         1x1 weights (out, in), BN scale folded in
                              (bf16 when use_mxu, else f32)
       b1/b3 : (C, 1)         folded BN biases (f32)
       wdw   : (9, C, 1)      depthwise 3x3 weights, tap = kh*3 + kw, BN folded
       bdw   : (C, 1)
       o_ref : (TB, C, 2L)    fused channel-shuffle output:
                              row c = [x1[c] (L lanes) | y2[c] (L lanes)]."""
    L = H * W
    d = dil
    o_dt = o_ref.dtype

    # ---- hoisted tap table: lane shift + ONE combined validity mask per tap.
    # Row validity expressed on the flat pixel index (no integer division),
    # column validity on col = pix % W; built once, reused for all TB samples.
    pix = lax.broadcasted_iota(jnp.int32, (C, L), 1)
    col = pix % W
    taps = []
    for kh in range(3):
        for kw in range(3):
            dh = (kh - 1) * d
            dw = (kw - 1) * d
            conds = []
            if dh > 0:
                conds.append(pix < (H - dh) * W)
            elif dh < 0:
                conds.append(pix >= (-dh) * W)
            if dw > 0:
                conds.append(col < W - dw)
            elif dw < 0:
                conds.append(col >= -dw)
            mask = None
            if conds:
                mask = conds[0]
                for extra in conds[1:]:
                    mask = mask & extra
            taps.append((kh * 3 + kw, dh * W + dw, mask))

    def shift_lanes(v, s):
        # y[:, p] = v[:, (p + s) mod L]  (s static; wrap-around is masked out
        # by the caller's validity mask).
        if s == 0:
            return v
        if L % 128 == 0:
            return pltpu.roll(v, shift=(-s) % L, axis=1)   # XLU rotate
        # Fallback for non-lane-aligned L: zero-filled lane shift.
        if s > 0:
            return jnp.concatenate([v[:, s:], jnp.zeros((C, s), v.dtype)],
                                   axis=1)
        return jnp.concatenate([jnp.zeros((C, -s), v.dtype), v[:, :L + s]],
                               axis=1)

    def conv1x1(w_ref, b_ref, src):
        if use_mxu:
            # bf16 operands, f32 accumulation (weights pre-cast in wrapper).
            out = jnp.dot(w_ref[...], src.astype(jnp.bfloat16),
                          preferred_element_type=jnp.float32)
        else:
            # Tiny channel counts: a handful of lane-dense VPU FMAs.
            w = w_ref[...]
            srcf = src.astype(jnp.float32)
            out = w[:, 0:1] * srcf[0:1, :]
            for ci in range(1, C):
                out = out + w[:, ci:ci + 1] * srcf[ci:ci + 1, :]
        return out + b_ref[...]

    for b in range(TB):
        x1 = x_ref[b, 0, :, :]                     # (C, L) pass-through half
        x2 = x_ref[b, 1, :, :]                     # (C, L) conv-branch input

        # ---- conv1: 1x1 + folded BN + ReLU ----------------------------------
        h1 = jnp.maximum(conv1x1(w1_ref, b1_ref, x2), 0.0)

        # ---- conv2: 3x3 depthwise, stride 1, pad=d, dil=d, folded BN --------
        acc = jnp.zeros((C, L), jnp.float32)
        for kidx, s, mask in taps:
            tap = shift_lanes(h1, s)
            if mask is not None:
                tap = jnp.where(mask, tap, 0.0)
            acc = acc + tap * wdw_ref[kidx, :, :]          # (C, 1) broadcast
        h2 = acc + bdw_ref[...]

        # ---- conv3: 1x1 + folded BN + ReLU ----------------------------------
        h3 = jnp.maximum(conv1x1(w3_ref, b3_ref, h2), 0.0)

        # ---- fused concat + channel_shuffle(groups=2): one dense store ------
        # out channel 2c = x1[c], 2c+1 = y2[c]  <=>  row c = [x1[c] | y2[c]].
        o_ref[b, :, :] = jnp.concatenate(
            [x1.astype(o_dt), h3.astype(o_dt)], axis=1)


def _pick_batch_tile(n, cap=_MAX_BATCH_TILE):
    tb = min(n, cap)
    while n % tb:
        tb -= 1
    return tb


def _block_pallas(x_split, w1, b1, wdw, bdw, w3, b3, *, H, W, dilation,
                  use_mxu):
    N, _, C, L = x_split.shape
    TB = _pick_batch_tile(N)
    out_dtype = x_split.dtype
    kern = functools.partial(_block_kernel, dilation, H, W, C, TB, use_mxu)

    def const_spec(shape):
        nd = len(shape)
        return pl.BlockSpec(shape, lambda n, _nd=nd: (0,) * _nd)

    flops = int(N * (4 * C * C * L + 22 * C * L))
    param_bytes = sum(int(a.size) * a.dtype.itemsize
                      for a in (w1, b1, wdw, bdw, w3, b3))
    bytes_accessed = int(x_split.size * x_split.dtype.itemsize
                         + N * C * 2 * L * jnp.dtype(out_dtype).itemsize
                         + (N // TB) * param_bytes)

    return pl.pallas_call(
        kern,
        grid=(N // TB,),
        in_specs=[
            pl.BlockSpec((TB, 2, C, L), lambda n: (n, 0, 0, 0)),
            const_spec(w1.shape), const_spec(b1.shape), const_spec(wdw.shape),
            const_spec(bdw.shape), const_spec(w3.shape), const_spec(b3.shape),
        ],
        out_specs=pl.BlockSpec((TB, C, 2 * L), lambda n: (n, 0, 0)),
        out_shape=jax.ShapeDtypeStruct((N, C, 2 * L), out_dtype),
        compiler_params=pltpu.CompilerParams(
            dimension_semantics=("parallel",),
            vmem_limit_bytes=48 * 1024 * 1024,
        ),
        cost_estimate=pl.CostEstimate(
            flops=flops, transcendentals=0, bytes_accessed=bytes_accessed),
    )(x_split, w1, b1, wdw, bdw, w3, b3)


# ----------------------------------------------------------------------------
# Wrapper: BN folding, weight re-layout, free contiguous reshapes (NCHW kept).
# ----------------------------------------------------------------------------
def basic_block_forward(x_nchw, p, dilation=1):
    N, Cin, H, W = x_nchw.shape
    C = Cin // 2

    # Fold eval-mode BN into per-output-channel scale / bias.
    s1 = p['g1'] / jnp.sqrt(p['v1'] + BN_EPS); bb1 = p['b1'] - p['m1'] * s1
    s2 = p['g2'] / jnp.sqrt(p['v2'] + BN_EPS); bb2 = p['b2'] - p['m2'] * s2
    s3 = p['g3'] / jnp.sqrt(p['v3'] + BN_EPS); bb3 = p['b3'] - p['m3'] * s3

    # Torch OIHW weights -> kernel layouts, scale folded in.
    w1k = p['w1'][:, :, 0, 0] * s1[:, None]                        # (Cout, Cin)
    wdwk = jnp.transpose(p['w2'][:, 0, :, :] * s2[:, None, None],
                         (1, 2, 0)).reshape(9, C)[:, :, None]      # (9, C, 1)
    w3k = p['w3'][:, :, 0, 0] * s3[:, None]                        # (Cout, Cin)

    use_mxu = C >= _MXU_MIN_CHANNELS
    if use_mxu:
        # Pre-cast folded 1x1 weights once; bf16 operands ~2x MXU throughput.
        w1k = w1k.astype(jnp.bfloat16)
        w3k = w3k.astype(jnp.bfloat16)

    # (N, 2C, H, W) -> (N, 2, C, H*W): free contiguous reshape; x1 = group 0.
    x_split = x_nchw.reshape(N, 2, C, H * W)
    out = _block_pallas(x_split, w1k, bb1[:, None], wdwk, bb2[:, None],
                        w3k, bb3[:, None], H=H, W=W, dilation=dilation,
                        use_mxu=use_mxu)
    # (N, C, 2*H*W) -> (N, 2C, H, W): byte order already equals the groups=2
    # channel shuffle of concat([x1, y2]); free contiguous reshape.
    return out.reshape(N, Cin, H, W)


# ----------------------------------------------------------------------------
# Pure-JAX reference (mirrors the PyTorch eval-mode forward), for validation.
# ----------------------------------------------------------------------------
def basic_block_ref(x, p, dilation=1):
    ch = x.shape[1] // 2
    x1, x2 = x[:, :ch], x[:, ch:]
    dn = ('NCHW', 'OIHW', 'NCHW')

    def bn(y, g, b, m, v):
        return (y - m[None, :, None, None]) / jnp.sqrt(
            v[None, :, None, None] + BN_EPS) * g[None, :, None, None] \
            + b[None, :, None, None]

    y = lax.conv_general_dilated(x2, p['w1'], (1, 1), 'VALID',
                                 dimension_numbers=dn,
                                 precision=lax.Precision.HIGHEST)
    y = jax.nn.relu(bn(y, p['g1'], p['b1'], p['m1'], p['v1']))
    y = lax.conv_general_dilated(y, p['w2'], (1, 1),
                                 [(dilation, dilation)] * 2,
                                 rhs_dilation=(dilation, dilation),
                                 dimension_numbers=dn, feature_group_count=ch,
                                 precision=lax.Precision.HIGHEST)
    y = bn(y, p['g2'], p['b2'], p['m2'], p['v2'])
    y = lax.conv_general_dilated(y, p['w3'], (1, 1), 'VALID',
                                 dimension_numbers=dn,
                                 precision=lax.Precision.HIGHEST)
    y = jax.nn.relu(bn(y, p['g3'], p['b3'], p['m3'], p['v3']))
    y = jnp.concatenate([x1, y], axis=1)
    n, c, h, w = y.shape
    return y.reshape(n, 2, c // 2, h, w).transpose(0, 2, 1, 3, 4).reshape(
        n, c, h, w)


# ----------------------------------------------------------------------------
if __name__ == "__main__":
    in_channels = out_channels = 8     # stride=1 requires in == out
    ch = out_channels // 2
    N, H, W = 2, 16, 16
    dilation = 1

    key = jax.random.PRNGKey(0)
    ks = jax.random.split(key, 16)
    p = {
        'w1': jax.random.normal(ks[0], (ch, ch, 1, 1), jnp.float32) * 0.2,
        'g1': jax.random.uniform(ks[1], (ch,), jnp.float32, 0.5, 1.5),
        'b1': jax.random.normal(ks[2], (ch,), jnp.float32) * 0.1,
        'm1': jax.random.normal(ks[3], (ch,), jnp.float32) * 0.1,
        'v1': jax.random.uniform(ks[4], (ch,), jnp.float32, 0.5, 1.5),
        'w2': jax.random.normal(ks[5], (ch, 1, 3, 3), jnp.float32) * 0.2,
        'g2': jax.random.uniform(ks[6], (ch,), jnp.float32, 0.5, 1.5),
        'b2': jax.random.normal(ks[7], (ch,), jnp.float32) * 0.1,
        'm2': jax.random.normal(ks[8], (ch,), jnp.float32) * 0.1,
        'v2': jax.random.uniform(ks[9], (ch,), jnp.float32, 0.5, 1.5),
        'w3': jax.random.normal(ks[10], (ch, ch, 1, 1), jnp.float32) * 0.2,
        'g3': jax.random.uniform(ks[11], (ch,), jnp.float32, 0.5, 1.5),
        'b3': jax.random.normal(ks[12], (ch,), jnp.float32) * 0.1,
        'm3': jax.random.normal(ks[13], (ch,), jnp.float32) * 0.1,
        'v3': jax.random.uniform(ks[14], (ch,), jnp.float32, 0.5, 1.5),
    }
    x = jax.random.normal(ks[15], (N, in_channels, H, W), jnp.float32)

    out = basic_block_forward(x, p, dilation=dilation)
    out = jax.block_until_ready(out)

    ref = jax.block_until_ready(basic_block_ref(x, p, dilation=dilation))
    np.testing.assert_allclose(np.asarray(out), np.asarray(ref),
                               rtol=1e-3, atol=1e-3)
    print("KERNEL_OK")
</pallas_src>

<mosaic_0001>
module attributes {stable_mosaic.version = 11 : i64} {
  func.func @_block_kernel(%arg0: i32, %arg1: memref<2x2x4x256xf32, #tpu.memory_space<vmem>>, %arg2: memref<4x4xf32, #tpu.memory_space<vmem>>, %arg3: memref<4x1xf32, #tpu.memory_space<vmem>>, %arg4: memref<9x4x1xf32, #tpu.memory_space<vmem>>, %arg5: memref<4x1xf32, #tpu.memory_space<vmem>>, %arg6: memref<4x4xf32, #tpu.memory_space<vmem>>, %arg7: memref<4x1xf32, #tpu.memory_space<vmem>>, %arg8: memref<2x4x512xf32, #tpu.memory_space<vmem>>) attributes {dimension_semantics = [#tpu.dimension_semantics<parallel>], iteration_bounds = array<i64: 1>, scalar_prefetch = 0 : i64, scratch_operands = 0 : i64, tpu.core_type = #tpu.core_type<tc>, window_params = [{transform_indices = @transform_0, window_bounds = array<i64: 2, 2, 4, 256>}, {pipeline_mode = #tpu.pipeline_mode<synchronous>, transform_indices = @transform_1, window_bounds = array<i64: 4, 4>}, {pipeline_mode = #tpu.pipeline_mode<synchronous>, transform_indices = @transform_2, window_bounds = array<i64: 4, 1>}, {pipeline_mode = #tpu.pipeline_mode<synchronous>, transform_indices = @transform_3, window_bounds = array<i64: 9, 4, 1>}, {pipeline_mode = #tpu.pipeline_mode<synchronous>, transform_indices = @transform_4, window_bounds = array<i64: 4, 1>}, {pipeline_mode = #tpu.pipeline_mode<synchronous>, transform_indices = @transform_5, window_bounds = array<i64: 4, 4>}, {pipeline_mode = #tpu.pipeline_mode<synchronous>, transform_indices = @transform_6, window_bounds = array<i64: 4, 1>}, {transform_indices = @transform_7, window_bounds = array<i64: 2, 4, 512>}]} {
    %0 = tpu.iota {dimensions = array<i32: 1>} : vector<4x256xi32>
    %c16_i32 = arith.constant 16 : i32
    %c0_i32 = arith.constant 0 : i32
    %1 = arith.cmpi eq, %c16_i32, %c0_i32 : i32
    %c1_i32 = arith.constant 1 : i32
    %2 = arith.select %1, %c1_i32, %c16_i32 : i32
    %3 = vector.broadcast %2 : i32 to vector<4x256xi32>
    %4 = arith.remsi %0, %3 : vector<4x256xi32>
    %c0_i32_0 = arith.constant 0 : i32
    %5 = vector.broadcast %c0_i32_0 : i32 to vector<4x256xi32>
    %6 = arith.cmpi ne, %4, %5 : vector<4x256xi32>
    %c0_i32_1 = arith.constant 0 : i32
    %7 = vector.broadcast %c0_i32_1 : i32 to vector<4x256xi32>
    %8 = arith.cmpi slt, %4, %7 : vector<4x256xi32>
    %c0_i32_2 = arith.constant 0 : i32
    %9 = arith.cmpi slt, %2, %c0_i32_2 : i32
    %10 = vector.broadcast %9 : i1 to vector<4x256xi1>
    %11 = vector.broadcast %10 : vector<4x256xi1> to vector<4x256xi1>
    %12 = arith.xori %8, %11 : vector<4x256xi1>
    %13 = arith.andi %12, %6 : vector<4x256xi1>
    %14 = vector.broadcast %2 : i32 to vector<4x256xi32>
    %15 = arith.addi %4, %14 : vector<4x256xi32>
    %16 = arith.select %13, %15, %4 : vector<4x256xi1>, vector<4x256xi32>
    %c16_i32_3 = arith.constant 16 : i32
    %17 = vector.broadcast %c16_i32_3 : i32 to vector<4x256xi32>
    %18 = arith.cmpi sge, %0, %17 : vector<4x256xi32>
    %c1_i32_4 = arith.constant 1 : i32
    %19 = vector.broadcast %c1_i32_4 : i32 to vector<4x256xi32>
    %20 = arith.cmpi sge, %16, %19 : vector<4x256xi32>
    %21 = arith.andi %18, %20 : vector<4x256xi1>
    %c16_i32_5 = arith.constant 16 : i32
    %22 = vector.broadcast %c16_i32_5 : i32 to vector<4x256xi32>
    %23 = arith.cmpi sge, %0, %22 : vector<4x256xi32>
    %c16_i32_6 = arith.constant 16 : i32
    %24 = vector.broadcast %c16_i32_6 : i32 to vector<4x256xi32>
    %25 = arith.cmpi sge, %0, %24 : vector<4x256xi32>
    %c15_i32 = arith.constant 15 : i32
    %26 = vector.broadcast %c15_i32 : i32 to vector<4x256xi32>
    %27 = arith.cmpi slt, %16, %26 : vector<4x256xi32>
    %28 = arith.andi %25, %27 : vector<4x256xi1>
    %c1_i32_7 = arith.constant 1 : i32
    %29 = vector.broadcast %c1_i32_7 : i32 to vector<4x256xi32>
    %30 = arith.cmpi sge, %16, %29 : vector<4x256xi32>
    %c15_i32_8 = arith.constant 15 : i32
    %31 = vector.broadcast %c15_i32_8 : i32 to vector<4x256xi32>
    %32 = arith.cmpi slt, %16, %31 : vector<4x256xi32>
    %c240_i32 = arith.constant 240 : i32
    %33 = vector.broadcast %c240_i32 : i32 to vector<4x256xi32>
    %34 = arith.cmpi slt, %0, %33 : vector<4x256xi32>
    %c1_i32_9 = arith.constant 1 : i32
    %35 = vector.broadcast %c1_i32_9 : i32 to vector<4x256xi32>
    %36 = arith.cmpi sge, %16, %35 : vector<4x256xi32>
    %37 = arith.andi %34, %36 : vector<4x256xi1>
    %c240_i32_10 = arith.constant 240 : i32
    %38 = vector.broadcast %c240_i32_10 : i32 to vector<4x256xi32>
    %39 = arith.cmpi slt, %0, %38 : vector<4x256xi32>
    %c240_i32_11 = arith.constant 240 : i32
    %40 = vector.broadcast %c240_i32_11 : i32 to vector<4x256xi32>
    %41 = arith.cmpi slt, %0, %40 : vector<4x256xi32>
    %c15_i32_12 = arith.constant 15 : i32
    %42 = vector.broadcast %c15_i32_12 : i32 to vector<4x256xi32>
    %43 = arith.cmpi slt, %16, %42 : vector<4x256xi32>
    %44 = arith.andi %41, %43 : vector<4x256xi1>
    %c0 = arith.constant 0 : index
    %c0_13 = arith.constant 0 : index
    %c0_14 = arith.constant 0 : index
    %c0_15 = arith.constant 0 : index
    %45 = vector.load %arg1[%c0, %c0_13, %c0_14, %c0_15] : memref<2x2x4x256xf32, #tpu.memory_space<vmem>>, vector<1x1x4x256xf32>
    %46 = vector.shape_cast %45 : vector<1x1x4x256xf32> to vector<4x256xf32>
    %c0_16 = arith.constant 0 : index
    %c1 = arith.constant 1 : index
    %c0_17 = arith.constant 0 : index
    %c0_18 = arith.constant 0 : index
    %47 = vector.load %arg1[%c0_16, %c1, %c0_17, %c0_18] : memref<2x2x4x256xf32, #tpu.memory_space<vmem>>, vector<1x1x4x256xf32>
    %48 = vector.shape_cast %47 : vector<1x1x4x256xf32> to vector<4x256xf32>
    %c0_19 = arith.constant 0 : index
    %c0_20 = arith.constant 0 : index
    %49 = vector.load %arg2[%c0_19, %c0_20] : memref<4x4xf32, #tpu.memory_space<vmem>>, vector<4x4xf32>
    %50 = vector.extract_strided_slice %49 {offsets = [0, 0], sizes = [4, 1], strides = [1, 1]} : vector<4x4xf32> to vector<4x1xf32>
    %51 = vector.extract_strided_slice %48 {offsets = [0, 0], sizes = [1, 256], strides = [1, 1]} : vector<4x256xf32> to vector<1x256xf32>
    %52 = vector.broadcast %50 : vector<4x1xf32> to vector<4x256xf32>
    %53 = vector.broadcast %51 : vector<1x256xf32> to vector<4x256xf32>
    %54 = arith.mulf %52, %53 : vector<4x256xf32>
    %55 = vector.extract_strided_slice %49 {offsets = [0, 1], sizes = [4, 1], strides = [1, 1]} : vector<4x4xf32> to vector<4x1xf32>
    %56 = vector.extract_strided_slice %48 {offsets = [1, 0], sizes = [1, 256], strides = [1, 1]} : vector<4x256xf32> to vector<1x256xf32>
    %57 = vector.broadcast %55 : vector<4x1xf32> to vector<4x256xf32>
    %58 = vector.broadcast %56 : vector<1x256xf32> to vector<4x256xf32>
    %59 = arith.mulf %57, %58 : vector<4x256xf32>
    %60 = arith.addf %54, %59 : vector<4x256xf32>
    %61 = vector.extract_strided_slice %49 {offsets = [0, 2], sizes = [4, 1], strides = [1, 1]} : vector<4x4xf32> to vector<4x1xf32>
    %62 = vector.extract_strided_slice %48 {offsets = [2, 0], sizes = [1, 256], strides = [1, 1]} : vector<4x256xf32> to vector<1x256xf32>
    %63 = vector.broadcast %61 : vector<4x1xf32> to vector<4x256xf32>
    %64 = vector.broadcast %62 : vector<1x256xf32> to vector<4x256xf32>
    %65 = arith.mulf %63, %64 : vector<4x256xf32>
    %66 = arith.addf %60, %65 : vector<4x256xf32>
    %67 = vector.extract_strided_slice %49 {offsets = [0, 3], sizes = [4, 1], strides = [1, 1]} : vector<4x4xf32> to vector<4x1xf32>
    %68 = vector.extract_strided_slice %48 {offsets = [3, 0], sizes = [1, 256], strides = [1, 1]} : vector<4x256xf32> to vector<1x256xf32>
    %69 = vector.broadcast %67 : vector<4x1xf32> to vector<4x256xf32>
    %70 = vector.broadcast %68 : vector<1x256xf32> to vector<4x256xf32>
    %71 = arith.mulf %69, %70 : vector<4x256xf32>
    %72 = arith.addf %66, %71 : vector<4x256xf32>
    %c0_21 = arith.constant 0 : index
    %c0_22 = arith.constant 0 : index
    %73 = vector.load %arg3[%c0_21, %c0_22] : memref<4x1xf32, #tpu.memory_space<vmem>>, vector<4x1xf32>
    %74 = vector.broadcast %73 : vector<4x1xf32> to vector<4x256xf32>
    %75 = arith.addf %72, %74 : vector<4x256xf32>
    %cst = arith.constant 0.000000e+00 : f32
    %76 = vector.broadcast %cst : f32 to vector<4x256xf32>
    %77 = arith.maximumf %75, %76 : vector<4x256xf32>
    %cst_23 = arith.constant 0.000000e+00 : f32
    %78 = vector.broadcast %cst_23 : f32 to vector<4x256xf32>
    %c17_i32 = arith.constant 17 : i32
    %79 = tpu.dynamic_rotate %77 by %c17_i32 dim 1 : vector<4x256xf32>, i32 -> vector<4x256xf32>
    %cst_24 = arith.constant 0.000000e+00 : f32
    %80 = vector.broadcast %cst_24 : f32 to vector<4x256xf32>
    %81 = arith.select %21, %79, %80 : vector<4x256xi1>, vector<4x256xf32>
    %c0_25 = arith.constant 0 : index
    %c0_26 = arith.constant 0 : index
    %c0_27 = arith.constant 0 : index
    %82 = vector.load %arg4[%c0_25, %c0_26, %c0_27] : memref<9x4x1xf32, #tpu.memory_space<vmem>>, vector<1x4x1xf32>
    %83 = vector.shape_cast %82 : vector<1x4x1xf32> to vector<4x1xf32>
    %84 = vector.broadcast %83 : vector<4x1xf32> to vector<4x256xf32>
    %85 = arith.mulf %81, %84 : vector<4x256xf32>
    %86 = arith.addf %78, %85 : vector<4x256xf32>
    %c16_i32_28 = arith.constant 16 : i32
    %87 = tpu.dynamic_rotate %77 by %c16_i32_28 dim 1 : vector<4x256xf32>, i32 -> vector<4x256xf32>
    %cst_29 = arith.constant 0.000000e+00 : f32
    %88 = vector.broadcast %cst_29 : f32 to vector<4x256xf32>
    %89 = arith.select %23, %87, %88 : vector<4x256xi1>, vector<4x256xf32>
    %c1_30 = arith.constant 1 : index
    %c0_31 = arith.constant 0 : index
    %c0_32 = arith.constant 0 : index
    %90 = vector.load %arg4[%c1_30, %c0_31, %c0_32] : memref<9x4x1xf32, #tpu.memory_space<vmem>>, vector<1x4x1xf32>
    %91 = vector.shape_cast %90 : vector<1x4x1xf32> to vector<4x1xf32>
    %92 = vector.broadcast %91 : vector<4x1xf32> to vector<4x256xf32>
    %93 = arith.mulf %89, %92 : vector<4x256xf32>
    %94 = arith.addf %86, %93 : vector<4x256xf32>
    %c15_i32_33 = arith.constant 15 : i32
    %95 = tpu.dynamic_rotate %77 by %c15_i32_33 dim 1 : vector<4x256xf32>, i32 -> vector<4x256xf32>
    %cst_34 = arith.constant 0.000000e+00 : f32
    %96 = vector.broadcast %cst_34 : f32 to vector<4x256xf32>
    %97 = arith.select %28, %95, %96 : vector<4x256xi1>, vector<4x256xf32>
    %c2 = arith.constant 2 : index
    %c0_35 = arith.constant 0 : index
    %c0_36 = arith.constant 0 : index
    %98 = vector.load %arg4[%c2, %c0_35, %c0_36] : memref<9x4x1xf32, #tpu.memory_space<vmem>>, vector<1x4x1xf32>
    %99 = vector.shape_cast %98 : vector<1x4x1xf32> to vector<4x1xf32>
    %100 = vector.broadcast %99 : vector<4x1xf32> to vector<4x256xf32>
    %101 = arith.mulf %97, %100 : vector<4x256xf32>
    %102 = arith.addf %94, %101 : vector<4x256xf32>
    %c1_i32_37 = arith.constant 1 : i32
    %103 = tpu.dynamic_rotate %77 by %c1_i32_37 dim 1 : vector<4x256xf32>, i32 -> vector<4x256xf32>
    %cst_38 = arith.constant 0.000000e+00 : f32
    %104 = vector.broadcast %cst_38 : f32 to vector<4x256xf32>
    %105 = arith.select %30, %103, %104 : vector<4x256xi1>, vector<4x256xf32>
    %c3 = arith.constant 3 : index
    %c0_39 = arith.constant 0 : index
    %c0_40 = arith.constant 0 : index
    %106 = vector.load %arg4[%c3, %c0_39, %c0_40] : memref<9x4x1xf32, #tpu.memory_space<vmem>>, vector<1x4x1xf32>
    %107 = vector.shape_cast %106 : vector<1x4x1xf32> to vector<4x1xf32>
    %108 = vector.broadcast %107 : vector<4x1xf32> to vector<4x256xf32>
    %109 = arith.mulf %105, %108 : vector<4x256xf32>
    %110 = arith.addf %102, %109 : vector<4x256xf32>
    %c4 = arith.constant 4 : index
    %c0_41 = arith.constant 0 : index
    %c0_42 = arith.constant 0 : index
    %111 = vector.load %arg4[%c4, %c0_41, %c0_42] : memref<9x4x1xf32, #tpu.memory_space<vmem>>, vector<1x4x1xf32>
    %112 = vector.shape_cast %111 : vector<1x4x1xf32> to vector<4x1xf32>
    %113 = vector.broadcast %112 : vector<4x1xf32> to vector<4x256xf32>
    %114 = arith.mulf %77, %113 : vector<4x256xf32>
    %115 = arith.addf %110, %114 : vector<4x256xf32>
    %c255_i32 = arith.constant 255 : i32
    %116 = tpu.dynamic_rotate %77 by %c255_i32 dim 1 : vector<4x256xf32>, i32 -> vector<4x256xf32>
    %cst_43 = arith.constant 0.000000e+00 : f32
    %117 = vector.broadcast %cst_43 : f32 to vector<4x256xf32>
    %118 = arith.select %32, %116, %117 : vector<4x256xi1>, vector<4x256xf32>
    %c5 = arith.constant 5 : index
    %c0_44 = arith.constant 0 : index
    %c0_45 = arith.constant 0 : index
    %119 = vector.load %arg4[%c5, %c0_44, %c0_45] : memref<9x4x1xf32, #tpu.memory_space<vmem>>, vector<1x4x1xf32>
    %120 = vector.shape_cast %119 : vector<1x4x1xf32> to vector<4x1xf32>
    %121 = vector.broadcast %120 : vector<4x1xf32> to vector<4x256xf32>
    %122 = arith.mulf %118, %121 : vector<4x256xf32>
    %123 = arith.addf %115, %122 : vector<4x256xf32>
    %c241_i32 = arith.constant 241 : i32
    %124 = tpu.dynamic_rotate %77 by %c241_i32 dim 1 : vector<4x256xf32>, i32 -> vector<4x256xf32>
    %cst_46 = arith.constant 0.000000e+00 : f32
    %125 = vector.broadcast %cst_46 : f32 to vector<4x256xf32>
    %126 = arith.select %37, %124, %125 : vector<4x256xi1>, vector<4x256xf32>
    %c6 = arith.constant 6 : index
    %c0_47 = arith.constant 0 : index
    %c0_48 = arith.constant 0 : index
    %127 = vector.load %arg4[%c6, %c0_47, %c0_48] : memref<9x4x1xf32, #tpu.memory_space<vmem>>, vector<1x4x1xf32>
    %128 = vector.shape_cast %127 : vector<1x4x1xf32> to vector<4x1xf32>
    %129 = vector.broadcast %128 : vector<4x1xf32> to vector<4x256xf32>
    %130 = arith.mulf %126, %129 : vector<4x256xf32>
    %131 = arith.addf %123, %130 : vector<4x256xf32>
    %c240_i32_49 = arith.constant 240 : i32
    %132 = tpu.dynamic_rotate %77 by %c240_i32_49 dim 1 : vector<4x256xf32>, i32 -> vector<4x256xf32>
    %cst_50 = arith.constant 0.000000e+00 : f32
    %133 = vector.broadcast %cst_50 : f32 to vector<4x256xf32>
    %134 = arith.select %39, %132, %133 : vector<4x256xi1>, vector<4x256xf32>
    %c7 = arith.constant 7 : index
    %c0_51 = arith.constant 0 : index
    %c0_52 = arith.constant 0 : index
    %135 = vector.load %arg4[%c7, %c0_51, %c0_52] : memref<9x4x1xf32, #tpu.memory_space<vmem>>, vector<1x4x1xf32>
    %136 = vector.shape_cast %135 : vector<1x4x1xf32> to vector<4x1xf32>
    %137 = vector.broadcast %136 : vector<4x1xf32> to vector<4x256xf32>
    %138 = arith.mulf %134, %137 : vector<4x256xf32>
    %139 = arith.addf %131, %138 : vector<4x256xf32>
    %c239_i32 = arith.constant 239 : i32
    %140 = tpu.dynamic_rotate %77 by %c239_i32 dim 1 : vector<4x256xf32>, i32 -> vector<4x256xf32>
    %cst_53 = arith.constant 0.000000e+00 : f32
    %141 = vector.broadcast %cst_53 : f32 to vector<4x256xf32>
    %142 = arith.select %44, %140, %141 : vector<4x256xi1>, vector<4x256xf32>
    %c8 = arith.constant 8 : index
    %c0_54 = arith.constant 0 : index
    %c0_55 = arith.constant 0 : index
    %143 = vector.load %arg4[%c8, %c0_54, %c0_55] : memref<9x4x1xf32, #tpu.memory_space<vmem>>, vector<1x4x1xf32>
    %144 = vector.shape_cast %143 : vector<1x4x1xf32> to vector<4x1xf32>
    %145 = vector.broadcast %144 : vector<4x1xf32> to vector<4x256xf32>
    %146 = arith.mulf %142, %145 : vector<4x256xf32>
    %147 = arith.addf %139, %146 : vector<4x256xf32>
    %c0_56 = arith.constant 0 : index
    %c0_57 = arith.constant 0 : index
    %148 = vector.load %arg5[%c0_56, %c0_57] : memref<4x1xf32, #tpu.memory_space<vmem>>, vector<4x1xf32>
    %149 = vector.broadcast %148 : vector<4x1xf32> to vector<4x256xf32>
    %150 = arith.addf %147, %149 : vector<4x256xf32>
    %c0_58 = arith.constant 0 : index
    %c0_59 = arith.constant 0 : index
    %151 = vector.load %arg6[%c0_58, %c0_59] : memref<4x4xf32, #tpu.memory_space<vmem>>, vector<4x4xf32>
    %152 = vector.extract_strided_slice %151 {offsets = [0, 0], sizes = [4, 1], strides = [1, 1]} : vector<4x4xf32> to vector<4x1xf32>
    %153 = vector.extract_strided_slice %150 {offsets = [0, 0], sizes = [1, 256], strides = [1, 1]} : vector<4x256xf32> to vector<1x256xf32>
    %154 = vector.broadcast %152 : vector<4x1xf32> to vector<4x256xf32>
    %155 = vector.broadcast %153 : vector<1x256xf32> to vector<4x256xf32>
    %156 = arith.mulf %154, %155 : vector<4x256xf32>
    %157 = vector.extract_strided_slice %151 {offsets = [0, 1], sizes = [4, 1], strides = [1, 1]} : vector<4x4xf32> to vector<4x1xf32>
    %158 = vector.extract_strided_slice %150 {offsets = [1, 0], sizes = [1, 256], strides = [1, 1]} : vector<4x256xf32> to vector<1x256xf32>
    %159 = vector.broadcast %157 : vector<4x1xf32> to vector<4x256xf32>
    %160 = vector.broadcast %158 : vector<1x256xf32> to vector<4x256xf32>
    %161 = arith.mulf %159, %160 : vector<4x256xf32>
    %162 = arith.addf %156, %161 : vector<4x256xf32>
    %163 = vector.extract_strided_slice %151 {offsets = [0, 2], sizes = [4, 1], strides = [1, 1]} : vector<4x4xf32> to vector<4x1xf32>
    %164 = vector.extract_strided_slice %150 {offsets = [2, 0], sizes = [1, 256], strides = [1, 1]} : vector<4x256xf32> to vector<1x256xf32>
    %165 = vector.broadcast %163 : vector<4x1xf32> to vector<4x256xf32>
    %166 = vector.broadcast %164 : vector<1x256xf32> to vector<4x256xf32>
    %167 = arith.mulf %165, %166 : vector<4x256xf32>
    %168 = arith.addf %162, %167 : vector<4x256xf32>
    %169 = vector.extract_strided_slice %151 {offsets = [0, 3], sizes = [4, 1], strides = [1, 1]} : vector<4x4xf32> to vector<4x1xf32>
    %170 = vector.extract_strided_slice %150 {offsets = [3, 0], sizes = [1, 256], strides = [1, 1]} : vector<4x256xf32> to vector<1x256xf32>
    %171 = vector.broadcast %169 : vector<4x1xf32> to vector<4x256xf32>
    %172 = vector.broadcast %170 : vector<1x256xf32> to vector<4x256xf32>
    %173 = arith.mulf %171, %172 : vector<4x256xf32>
    %174 = arith.addf %168, %173 : vector<4x256xf32>
    %c0_60 = arith.constant 0 : index
    %c0_61 = arith.constant 0 : index
    %175 = vector.load %arg7[%c0_60, %c0_61] : memref<4x1xf32, #tpu.memory_space<vmem>>, vector<4x1xf32>
    %176 = vector.broadcast %175 : vector<4x1xf32> to vector<4x256xf32>
    %177 = arith.addf %174, %176 : vector<4x256xf32>
    %cst_62 = arith.constant 0.000000e+00 : f32
    %178 = vector.broadcast %cst_62 : f32 to vector<4x256xf32>
    %179 = arith.maximumf %177, %178 : vector<4x256xf32>
    %180 = tpu.concatenate %46, %179 in 1 : vector<4x256xf32>, vector<4x256xf32> -> vector<4x512xf32>
    %c0_63 = arith.constant 0 : index
    %c0_64 = arith.constant 0 : index
    %c0_65 = arith.constant 0 : index
    %181 = vector.load %arg8[%c0_63, %c0_64, %c0_65] : memref<2x4x512xf32, #tpu.memory_space<vmem>>, vector<1x4x512xf32>
    %182 = vector.shape_cast %181 : vector<1x4x512xf32> to vector<4x512xf32>
    %183 = vector.shape_cast %180 : vector<4x512xf32> to vector<1x4x512xf32>
    tpu.vector_store %arg8[%c0_63, %c0_64, %c0_65], %183 {strides = array<i32>} : memref<2x4x512xf32, #tpu.memory_space<vmem>>, vector<1x4x512xf32>,
    %c1_66 = arith.constant 1 : index
    %c0_67 = arith.constant 0 : index
    %c0_68 = arith.constant 0 : index
    %c0_69 = arith.constant 0 : index
    %184 = vector.load %arg1[%c1_66, %c0_67, %c0_68, %c0_69] : memref<2x2x4x256xf32, #tpu.memory_space<vmem>>, vector<1x1x4x256xf32>
    %185 = vector.shape_cast %184 : vector<1x1x4x256xf32> to vector<4x256xf32>
    %c1_70 = arith.constant 1 : index
    %c1_71 = arith.constant 1 : index
    %c0_72 = arith.constant 0 : index
    %c0_73 = arith.constant 0 : index
    %186 = vector.load %arg1[%c1_70, %c1_71, %c0_72, %c0_73] : memref<2x2x4x256xf32, #tpu.memory_space<vmem>>, vector<1x1x4x256xf32>
    %187 = vector.shape_cast %186 : vector<1x1x4x256xf32> to vector<4x256xf32>
    %c0_74 = arith.constant 0 : index
    %c0_75 = arith.constant 0 : index
    %188 = vector.load %arg2[%c0_74, %c0_75] : memref<4x4xf32, #tpu.memory_space<vmem>>, vector<4x4xf32>
    %189 = vector.extract_strided_slice %188 {offsets = [0, 0], sizes = [4, 1], strides = [1, 1]} : vector<4x4xf32> to vector<4x1xf32>
    %190 = vector.extract_strided_slice %187 {offsets = [0, 0], sizes = [1, 256], strides = [1, 1]} : vector<4x256xf32> to vector<1x256xf32>
    %191 = vector.broadcast %189 : vector<4x1xf32> to vector<4x256xf32>
    %192 = vector.broadcast %190 : vector<1x256xf32> to vector<4x256xf32>
    %193 = arith.mulf %191, %192 : vector<4x256xf32>
    %194 = vector.extract_strided_slice %188 {offsets = [0, 1], sizes = [4, 1], strides = [1, 1]} : vector<4x4xf32> to vector<4x1xf32>
    %195 = vector.extract_strided_slice %187 {offsets = [1, 0], sizes = [1, 256], strides = [1, 1]} : vector<4x256xf32> to vector<1x256xf32>
    %196 = vector.broadcast %194 : vector<4x1xf32> to vector<4x256xf32>
    %197 = vector.broadcast %195 : vector<1x256xf32> to vector<4x256xf32>
    %198 = arith.mulf %196, %197 : vector<4x256xf32>
    %199 = arith.addf %193, %198 : vector<4x256xf32>
    %200 = vector.extract_strided_slice %188 {offsets = [0, 2], sizes = [4, 1], strides = [1, 1]} : vector<4x4xf32> to vector<4x1xf32>
    %201 = vector.extract_strided_slice %187 {offsets = [2, 0], sizes = [1, 256], strides = [1, 1]} : vector<4x256xf32> to vector<1x256xf32>
    %202 = vector.broadcast %200 : vector<4x1xf32> to vector<4x256xf32>
    %203 = vector.broadcast %201 : vector<1x256xf32> to vector<4x256xf32>
    %204 = arith.mulf %202, %203 : vector<4x256xf32>
    %205 = arith.addf %199, %204 : vector<4x256xf32>
    %206 = vector.extract_strided_slice %188 {offsets = [0, 3], sizes = [4, 1], strides = [1, 1]} : vector<4x4xf32> to vector<4x1xf32>
    %207 = vector.extract_strided_slice %187 {offsets = [3, 0], sizes = [1, 256], strides = [1, 1]} : vector<4x256xf32> to vector<1x256xf32>
    %208 = vector.broadcast %206 : vector<4x1xf32> to vector<4x256xf32>
    %209 = vector.broadcast %207 : vector<1x256xf32> to vector<4x256xf32>
    %210 = arith.mulf %208, %209 : vector<4x256xf32>
    %211 = arith.addf %205, %210 : vector<4x256xf32>
    %c0_76 = arith.constant 0 : index
    %c0_77 = arith.constant 0 : index
    %212 = vector.load %arg3[%c0_76, %c0_77] : memref<4x1xf32, #tpu.memory_space<vmem>>, vector<4x1xf32>
    %213 = vector.broadcast %212 : vector<4x1xf32> to vector<4x256xf32>
    %214 = arith.addf %211, %213 : vector<4x256xf32>
    %cst_78 = arith.constant 0.000000e+00 : f32
    %215 = vector.broadcast %cst_78 : f32 to vector<4x256xf32>
    %216 = arith.maximumf %214, %215 : vector<4x256xf32>
    %cst_79 = arith.constant 0.000000e+00 : f32
    %217 = vector.broadcast %cst_79 : f32 to vector<4x256xf32>
    %c17_i32_80 = arith.constant 17 : i32
    %218 = tpu.dynamic_rotate %216 by %c17_i32_80 dim 1 : vector<4x256xf32>, i32 -> vector<4x256xf32>
    %cst_81 = arith.constant 0.000000e+00 : f32
    %219 = vector.broadcast %cst_81 : f32 to vector<4x256xf32>
    %220 = arith.select %21, %218, %219 : vector<4x256xi1>, vector<4x256xf32>
    %c0_82 = arith.constant 0 : index
    %c0_83 = arith.constant 0 : index
    %c0_84 = arith.constant 0 : index
    %221 = vector.load %arg4[%c0_82, %c0_83, %c0_84] : memref<9x4x1xf32, #tpu.memory_space<vmem>>, vector<1x4x1xf32>
    %222 = vector.shape_cast %221 : vector<1x4x1xf32> to vector<4x1xf32>
    %223 = vector.broadcast %222 : vector<4x1xf32> to vector<4x256xf32>
    %224 = arith.mulf %220, %223 : vector<4x256xf32>
    %225 = arith.addf %217, %224 : vector<4x256xf32>
    %c16_i32_85 = arith.constant 16 : i32
    %226 = tpu.dynamic_rotate %216 by %c16_i32_85 dim 1 : vector<4x256xf32>, i32 -> vector<4x256xf32>
    %cst_86 = arith.constant 0.000000e+00 : f32
    %227 = vector.broadcast %cst_86 : f32 to vector<4x256xf32>
    %228 = arith.select %23, %226, %227 : vector<4x256xi1>, vector<4x256xf32>
    %c1_87 = arith.constant 1 : index
    %c0_88 = arith.constant 0 : index
    %c0_89 = arith.constant 0 : index
    %229 = vector.load %arg4[%c1_87, %c0_88, %c0_89] : memref<9x4x1xf32, #tpu.memory_space<vmem>>, vector<1x4x1xf32>
    %230 = vector.shape_cast %229 : vector<1x4x1xf32> to vector<4x1xf32>
    %231 = vector.broadcast %230 : vector<4x1xf32> to vector<4x256xf32>
    %232 = arith.mulf %228, %231 : vector<4x256xf32>
    %233 = arith.addf %225, %232 : vector<4x256xf32>
    %c15_i32_90 = arith.constant 15 : i32
    %234 = tpu.dynamic_rotate %216 by %c15_i32_90 dim 1 : vector<4x256xf32>, i32 -> vector<4x256xf32>
    %cst_91 = arith.constant 0.000000e+00 : f32
    %235 = vector.broadcast %cst_91 : f32 to vector<4x256xf32>
    %236 = arith.select %28, %234, %235 : vector<4x256xi1>, vector<4x256xf32>
    %c2_92 = arith.constant 2 : index
    %c0_93 = arith.constant 0 : index
    %c0_94 = arith.constant 0 : index
    %237 = vector.load %arg4[%c2_92, %c0_93, %c0_94] : memref<9x4x1xf32, #tpu.memory_space<vmem>>, vector<1x4x1xf32>
    %238 = vector.shape_cast %237 : vector<1x4x1xf32> to vector<4x1xf32>
    %239 = vector.broadcast %238 : vector<4x1xf32> to vector<4x256xf32>
    %240 = arith.mulf %236, %239 : vector<4x256xf32>
    %241 = arith.addf %233, %240 : vector<4x256xf32>
    %c1_i32_95 = arith.constant 1 : i32
    %242 = tpu.dynamic_rotate %216 by %c1_i32_95 dim 1 : vector<4x256xf32>, i32 -> vector<4x256xf32>
    %cst_96 = arith.constant 0.000000e+00 : f32
    %243 = vector.broadcast %cst_96 : f32 to vector<4x256xf32>
    %244 = arith.select %30, %242, %243 : vector<4x256xi1>, vector<4x256xf32>
    %c3_97 = arith.constant 3 : index
    %c0_98 = arith.constant 0 : index
    %c0_99 = arith.constant 0 : index
    %245 = vector.load %arg4[%c3_97, %c0_98, %c0_99] : memref<9x4x1xf32, #tpu.memory_space<vmem>>, vector<1x4x1xf32>
    %246 = vector.shape_cast %245 : vector<1x4x1xf32> to vector<4x1xf32>
    %247 = vector.broadcast %246 : vector<4x1xf32> to vector<4x256xf32>
    %248 = arith.mulf %244, %247 : vector<4x256xf32>
    %249 = arith.addf %241, %248 : vector<4x256xf32>
    %c4_100 = arith.constant 4 : index
    %c0_101 = arith.constant 0 : index
    %c0_102 = arith.constant 0 : index
    %250 = vector.load %arg4[%c4_100, %c0_101, %c0_102] : memref<9x4x1xf32, #tpu.memory_space<vmem>>, vector<1x4x1xf32>
    %251 = vector.shape_cast %250 : vector<1x4x1xf32> to vector<4x1xf32>
    %252 = vector.broadcast %251 : vector<4x1xf32> to vector<4x256xf32>
    %253 = arith.mulf %216, %252 : vector<4x256xf32>
    %254 = arith.addf %249, %253 : vector<4x256xf32>
    %c255_i32_103 = arith.constant 255 : i32
    %255 = tpu.dynamic_rotate %216 by %c255_i32_103 dim 1 : vector<4x256xf32>, i32 -> vector<4x256xf32>
    %cst_104 = arith.constant 0.000000e+00 : f32
    %256 = vector.broadcast %cst_104 : f32 to vector<4x256xf32>
    %257 = arith.select %32, %255, %256 : vector<4x256xi1>, vector<4x256xf32>
    %c5_105 = arith.constant 5 : index
    %c0_106 = arith.constant 0 : index
    %c0_107 = arith.constant 0 : index
    %258 = vector.load %arg4[%c5_105, %c0_106, %c0_107] : memref<9x4x1xf32, #tpu.memory_space<vmem>>, vector<1x4x1xf32>
    %259 = vector.shape_cast %258 : vector<1x4x1xf32> to vector<4x1xf32>
    %260 = vector.broadcast %259 : vector<4x1xf32> to vector<4x256xf32>
    %261 = arith.mulf %257, %260 : vector<4x256xf32>
    %262 = arith.addf %254, %261 : vector<4x256xf32>
    %c241_i32_108 = arith.constant 241 : i32
    %263 = tpu.dynamic_rotate %216 by %c241_i32_108 dim 1 : vector<4x256xf32>, i32 -> vector<4x256xf32>
    %cst_109 = arith.constant 0.000000e+00 : f32
    %264 = vector.broadcast %cst_109 : f32 to vector<4x256xf32>
    %265 = arith.select %37, %263, %264 : vector<4x256xi1>, vector<4x256xf32>
    %c6_110 = arith.constant 6 : index
    %c0_111 = arith.constant 0 : index
    %c0_112 = arith.constant 0 : index
    %266 = vector.load %arg4[%c6_110, %c0_111, %c0_112] : memref<9x4x1xf32, #tpu.memory_space<vmem>>, vector<1x4x1xf32>
    %267 = vector.shape_cast %266 : vector<1x4x1xf32> to vector<4x1xf32>
    %268 = vector.broadcast %267 : vector<4x1xf32> to vector<4x256xf32>
    %269 = arith.mulf %265, %268 : vector<4x256xf32>
    %270 = arith.addf %262, %269 : vector<4x256xf32>
    %c240_i32_113 = arith.constant 240 : i32
    %271 = tpu.dynamic_rotate %216 by %c240_i32_113 dim 1 : vector<4x256xf32>, i32 -> vector<4x256xf32>
    %cst_114 = arith.constant 0.000000e+00 : f32
    %272 = vector.broadcast %cst_114 : f32 to vector<4x256xf32>
    %273 = arith.select %39, %271, %272 : vector<4x256xi1>, vector<4x256xf32>
    %c7_115 = arith.constant 7 : index
    %c0_116 = arith.constant 0 : index
    %c0_117 = arith.constant 0 : index
    %274 = vector.load %arg4[%c7_115, %c0_116, %c0_117] : memref<9x4x1xf32, #tpu.memory_space<vmem>>, vector<1x4x1xf32>
    %275 = vector.shape_cast %274 : vector<1x4x1xf32> to vector<4x1xf32>
    %276 = vector.broadcast %275 : vector<4x1xf32> to vector<4x256xf32>
    %277 = arith.mulf %273, %276 : vector<4x256xf32>
    %278 = arith.addf %270, %277 : vector<4x256xf32>
    %c239_i32_118 = arith.constant 239 : i32
    %279 = tpu.dynamic_rotate %216 by %c239_i32_118 dim 1 : vector<4x256xf32>, i32 -> vector<4x256xf32>
    %cst_119 = arith.constant 0.000000e+00 : f32
    %280 = vector.broadcast %cst_119 : f32 to vector<4x256xf32>
    %281 = arith.select %44, %279, %280 : vector<4x256xi1>, vector<4x256xf32>
    %c8_120 = arith.constant 8 : index
    %c0_121 = arith.constant 0 : index
    %c0_122 = arith.constant 0 : index
    %282 = vector.load %arg4[%c8_120, %c0_121, %c0_122] : memref<9x4x1xf32, #tpu.memory_space<vmem>>, vector<1x4x1xf32>
    %283 = vector.shape_cast %282 : vector<1x4x1xf32> to vector<4x1xf32>
    %284 = vector.broadcast %283 : vector<4x1xf32> to vector<4x256xf32>
    %285 = arith.mulf %281, %284 : vector<4x256xf32>
    %286 = arith.addf %278, %285 : vector<4x256xf32>
    %c0_123 = arith.constant 0 : index
    %c0_124 = arith.constant 0 : index
    %287 = vector.load %arg5[%c0_123, %c0_124] : memref<4x1xf32, #tpu.memory_space<vmem>>, vector<4x1xf32>
    %288 = vector.broadcast %287 : vector<4x1xf32> to vector<4x256xf32>
    %289 = arith.addf %286, %288 : vector<4x256xf32>
    %c0_125 = arith.constant 0 : index
    %c0_126 = arith.constant 0 : index
    %290 = vector.load %arg6[%c0_125, %c0_126] : memref<4x4xf32, #tpu.memory_space<vmem>>, vector<4x4xf32>
    %291 = vector.extract_strided_slice %290 {offsets = [0, 0], sizes = [4, 1], strides = [1, 1]} : vector<4x4xf32> to vector<4x1xf32>
    %292 = vector.extract_strided_slice %289 {offsets = [0, 0], sizes = [1, 256], strides = [1, 1]} : vector<4x256xf32> to vector<1x256xf32>
    %293 = vector.broadcast %291 : vector<4x1xf32> to vector<4x256xf32>
    %294 = vector.broadcast %292 : vector<1x256xf32> to vector<4x256xf32>
    %295 = arith.mulf %293, %294 : vector<4x256xf32>
    %296 = vector.extract_strided_slice %290 {offsets = [0, 1], sizes = [4, 1], strides = [1, 1]} : vector<4x4xf32> to vector<4x1xf32>
    %297 = vector.extract_strided_slice %289 {offsets = [1, 0], sizes = [1, 256], strides = [1, 1]} : vector<4x256xf32> to vector<1x256xf32>
    %298 = vector.broadcast %296 : vector<4x1xf32> to vector<4x256xf32>
    %299 = vector.broadcast %297 : vector<1x256xf32> to vector<4x256xf32>
    %300 = arith.mulf %298, %299 : vector<4x256xf32>
    %301 = arith.addf %295, %300 : vector<4x256xf32>
    %302 = vector.extract_strided_slice %290 {offsets = [0, 2], sizes = [4, 1], strides = [1, 1]} : vector<4x4xf32> to vector<4x1xf32>
    %303 = vector.extract_strided_slice %289 {offsets = [2, 0], sizes = [1, 256], strides = [1, 1]} : vector<4x256xf32> to vector<1x256xf32>
    %304 = vector.broadcast %302 : vector<4x1xf32> to vector<4x256xf32>
    %305 = vector.broadcast %303 : vector<1x256xf32> to vector<4x256xf32>
    %306 = arith.mulf %304, %305 : vector<4x256xf32>
    %307 = arith.addf %301, %306 : vector<4x256xf32>
    %308 = vector.extract_strided_slice %290 {offsets = [0, 3], sizes = [4, 1], strides = [1, 1]} : vector<4x4xf32> to vector<4x1xf32>
    %309 = vector.extract_strided_slice %289 {offsets = [3, 0], sizes = [1, 256], strides = [1, 1]} : vector<4x256xf32> to vector<1x256xf32>
    %310 = vector.broadcast %308 : vector<4x1xf32> to vector<4x256xf32>
    %311 = vector.broadcast %309 : vector<1x256xf32> to vector<4x256xf32>
    %312 = arith.mulf %310, %311 : vector<4x256xf32>
    %313 = arith.addf %307, %312 : vector<4x256xf32>
    %c0_127 = arith.constant 0 : index
    %c0_128 = arith.constant 0 : index
    %314 = vector.load %arg7[%c0_127, %c0_128] : memref<4x1xf32, #tpu.memory_space<vmem>>, vector<4x1xf32>
    %315 = vector.broadcast %314 : vector<4x1xf32> to vector<4x256xf32>
    %316 = arith.addf %313, %315 : vector<4x256xf32>
    %cst_129 = arith.constant 0.000000e+00 : f32
    %317 = vector.broadcast %cst_129 : f32 to vector<4x256xf32>
    %318 = arith.maximumf %316, %317 : vector<4x256xf32>
    %319 = tpu.concatenate %185, %318 in 1 : vector<4x256xf32>, vector<4x256xf32> -> vector<4x512xf32>
    %c1_130 = arith.constant 1 : index
    %c0_131 = arith.constant 0 : index
    %c0_132 = arith.constant 0 : index
    %320 = vector.load %arg8[%c1_130, %c0_131, %c0_132] : memref<2x4x512xf32, #tpu.memory_space<vmem>>, vector<1x4x512xf32>
    %321 = vector.shape_cast %320 : vector<1x4x512xf32> to vector<4x512xf32>
    %322 = vector.shape_cast %319 : vector<4x512xf32> to vector<1x4x512xf32>
    tpu.vector_store %arg8[%c1_130, %c0_131, %c0_132], %322 {strides = array<i32>} : memref<2x4x512xf32, #tpu.memory_space<vmem>>, vector<1x4x512xf32>,
    return
  }
  func.func @transform_0(%arg0: i32) -> (i32, i32, i32, i32) {
    %c0_i32 = arith.constant 0 : i32
    %c0_i32_0 = arith.constant 0 : i32
    %c0_i32_1 = arith.constant 0 : i32
    %c0_i32_2 = arith.constant 0 : i32
    return %arg0, %c0_i32, %c0_i32_0, %c0_i32_1 : i32, i32, i32, i32
  }
  func.func @transform_1(%arg0: i32) -> (i32, i32) {
    %c0_i32 = arith.constant 0 : i32
    %c0_i32_0 = arith.constant 0 : i32
    %c0_i32_1 = arith.constant 0 : i32
    return %c0_i32, %c0_i32_0 : i32, i32
  }
  func.func @transform_2(%arg0: i32) -> (i32, i32) {
    %c0_i32 = arith.constant 0 : i32
    %c0_i32_0 = arith.constant 0 : i32
    %c0_i32_1 = arith.constant 0 : i32
    return %c0_i32, %c0_i32_0 : i32, i32
  }
  func.func @transform_3(%arg0: i32) -> (i32, i32, i32) {
    %c0_i32 = arith.constant 0 : i32
    %c0_i32_0 = arith.constant 0 : i32
    %c0_i32_1 = arith.constant 0 : i32
    %c0_i32_2 = arith.constant 0 : i32
    return %c0_i32, %c0_i32_0, %c0_i32_1 : i32, i32, i32
  }
  func.func @transform_4(%arg0: i32) -> (i32, i32) {
    %c0_i32 = arith.constant 0 : i32
    %c0_i32_0 = arith.constant 0 : i32
    %c0_i32_1 = arith.constant 0 : i32
    return %c0_i32, %c0_i32_0 : i32, i32
  }
  func.func @transform_5(%arg0: i32) -> (i32, i32) {
    %c0_i32 = arith.constant 0 : i32
    %c0_i32_0 = arith.constant 0 : i32
    %c0_i32_1 = arith.constant 0 : i32
    return %c0_i32, %c0_i32_0 : i32, i32
  }
  func.func @transform_6(%arg0: i32) -> (i32, i32) {
    %c0_i32 = arith.constant 0 : i32
    %c0_i32_0 = arith.constant 0 : i32
    %c0_i32_1 = arith.constant 0 : i32
    return %c0_i32, %c0_i32_0 : i32, i32
  }
  func.func @transform_7(%arg0: i32) -> (i32, i32, i32) {
    %c0_i32 = arith.constant 0 : i32
    %c0_i32_0 = arith.constant 0 : i32
    %c0_i32_1 = arith.constant 0 : i32
    return %arg0, %c0_i32, %c0_i32_0 : i32, i32, i32
  }
}

</mosaic_0001>

<bundles_post_ra>
// kernel: tpu_custom_call.1
= control target key start
LH: loop header
LB: loop body
LE: loop exit
PB: predicated region body
PF: predicated region fallthrough
CT: control target
= control target key end

     0   :  { %v908_v1 = vmov 2   ;;  %v909_v2 = vmov 1   ;;  %v910_v4 = vmov 3   ;;  %s1505_s0 = inlined_call_operand.vmem [shape: f32[2,2,4,256], index: 0, kind: input, shape index: {}]   ;;  %s1506_s1 = inlined_call_operand.vmem [shape: f32[4,4], index: 1, kind: input, shape index: {}]   ;;  %s1507_s2 = inlined_call_operand.vmem [shape: f32[4,1], index: 2, kind: input, shape index: {}]   ;;  %s1508_s3 = inlined_call_operand.vmem [shape: f32[9,4,1], index: 3, kind: input, shape index: {}]   ;;  %s1509_s4 = inlined_call_operand.vmem [shape: f32[4,1], index: 4, kind: input, shape index: {}]   ;;  %s1510_s5 = inlined_call_operand.vmem [shape: f32[4,4], index: 5, kind: input, shape index: {}]   ;;  %s1511_s6 = inlined_call_operand.vmem [shape: f32[4,1], index: 6, kind: input, shape index: {}]   ;;  %s1512_s7 = inlined_call_operand.hbm [shape: f32[2,4,512], index: 7, kind: output, shape index: {}]  }
   0x1   :  { %v73_v0 = vld [vmem:[%s1506_s1] sm:$0xf]  ;;  %866 = vset.pattern.permute.xlu1 %v908_v1  ;;  %865 = vset.pattern.permute.xlu0 %v909_v2 }
   0x2   :  { %127 = vperm.xlu1 %866, %v73_v0   ;;  %101 = vperm.xlu0 %865, %v73_v0   ;;  %v454_v3 = vld [vmem:[%s1506_s1] sm:$0xf] }
   0x3   :  { %v974_v5 = vld [vmem:[%s1510_s5] sm:$0xf] }
   0x4   :  { %v178_v6 = vld [vmem:[%s1507_s2] sm:$0xf] }
   0x6   :  { %867 = vset.pattern.permute.xlu1 %v910_v4  ;;  %482 = vperm.xlu0 %865, %v454_v3  }
   0x7   :  { %153 = vperm.xlu1 %867, %v73_v0  }
   0xa   :  { %873 = vset.pattern.permute.xlu0 %v908_v1 }
   0xb   :  { %12 = vsyncpa [#allocation3], 0  ;;  %v911_v7 = vmov 0   ;;  %399 = vperm.xlu0 %873, %v974_v5   ;;  %v834_v8 = vld [vmem:[%s1508_s3 + $0x8] sm:$0xf]  ;;  %v27_v30 = vlaneseq  ;;  %s912_s25 = smov 17  }
   0xc   :  { %868 = vset.pattern.permute.xlu1 %v911_v7  ;;  %v197_v9 = vld [vmem:[%s1508_s3] sm:$0xf]  ;;  %v833_v10 = vld [vmem:[%s1508_s3 + $0x4] sm:$0xf]  ;;  %v835_v11 = vld [vmem:[%s1508_s3 + $0xc] sm:$0xf] }
   0xd   :  { %181 = vperm.xlu1 %868, %v178_v6   ;;  %v559_v12 = vld [vmem:[%s1507_s2] sm:$0xf]  ;;  %v836_v13 = vld [vmem:[%s1508_s3 + $0x10] sm:$0xf]  ;;  %v838_v14 = vld [vmem:[%s1508_s3 + $0x18] sm:$0xf] }
   0xe   :  { %v837_v15 = vld [vmem:[%s1508_s3 + $0x14] sm:$0xf]  ;;  %v840_v16 = vld [vmem:[%s1508_s3 + $0x20] sm:$0xf]  ;;  %v839_v17 = vld [vmem:[%s1508_s3 + $0x1c] sm:$0xf] }
   0xf   :  { %874 = vset.pattern.permute.xlu0 %v911_v7  ;;  %v358_v18 = vld [vmem:[%s1509_s4] sm:$0xf]  ;;  %v844_v19 = vld [vmem:[%s1508_s3 + $0x8] sm:$0xf]  ;;  %v847_v20 = vld [vmem:[%s1508_s3 + $0x14] sm:$0xf] }
  0x10   :  { %76 = vperm.xlu0 %874, %v73_v0   ;;  %v849_v21 = vld [vmem:[%s1508_s3 + $0x1c] sm:$0xf]  ;;  %v577_v22 = vld [vmem:[%s1508_s3] sm:$0xf]  ;;  %v843_v24 = vld [vmem:[%s1508_s3 + $0x4] sm:$0xf] }
  0x11   :  { %240 = vperm.xlu1 %868, %v834_v8   ;;  %v723_v23 = vld [vmem:[%s1509_s4] sm:$0xf]  ;;  %v845_v25 = vld [vmem:[%s1508_s3 + $0xc] sm:$0xf]  ;;  %v846_v26 = vld [vmem:[%s1508_s3 + $0x10] sm:$0xf] }
  0x12   :  { %v848_v27 = vld [vmem:[%s1508_s3 + $0x18] sm:$0xf]  ;;  %v850_v28 = vld [vmem:[%s1508_s3 + $0x20] sm:$0xf]  ;;  %v1062_v31 = vshrl.u32 %v27_v30, 7  ;;  %v832_v38 = vld [vmem:[%s1505_s0 + $0x8] sm:$0xff] }
  0x13   :  { %v1057_v29 = vld [vmem:[%s1510_s5] sm:$0xf]  ;;  %s913_s28 = smov 16   ;;  %s914_s29 = smov 15  }
  0x14   :  { %200 = vperm.xlu0 %874, %v197_v9   ;;  %v1065_v34 = vsub.s32 1, %v1062_v31  ;;  %v110_v35 = vsub.s32 5, %v1062_v31  ;;  %v1069_v36 = vsub.s32 0, %v1062_v31  ;;  %v86_v37 = vsub.s32 4, %v1062_v31  ;;  %s915_s30 = smov 1   ;;  %s916_s8 = smov 127  }
  0x15   :  { %457 = vperm.xlu1 %868, %v454_v3   ;;  %v1076_v39 = vsub.s32 2, %v1062_v31  ;;  %v136_v40 = vsub.s32 6, %v1062_v31  ;;  %v1082_v43 = vsub.s32 3, %v1062_v31  ;;  %v162_v44 = vsub.s32 7, %v1062_v31  ;;  %s917_s1 = smov 113   ;;  %s918_s9 = smov 112  }
  0x16   :  { %v107_v45 = vrot.slane %v832_v38, %v1065_v34  ;;  %v111_v46 = vrot.slane %v832_v38, %v110_v35  ;;  %v83_v47 = vrot.slane %v832_v38, %v1069_v36  ;;  %v87_v48 = vrot.slane %v832_v38, %v86_v37  ;;  %s919_s10 = smov 111  }
  0x17   :  { %v133_v49 = vrot.slane %v832_v38, %v1076_v39  ;;  %v137_v50 = vrot.slane %v832_v38, %v136_v40  ;;  %v159_v51 = vrot.slane %v832_v38, %v1082_v43  ;;  %v163_v52 = vrot.slane %v832_v38, %v162_v44 }
  0x18   :  { %220 = vperm.xlu0 %874, %v833_v10   ;;  %v117_v55 = vrot.slane %v107_v45, %v1065_v34  ;;  %v121_v56 = vrot.slane %v111_v46, %v1065_v34  ;;  %v93_v57 = vrot.slane %v83_v47, %v1069_v36  ;;  %v97_v58 = vrot.slane %v87_v48, %v1069_v36 }
  0x19   :  { %869 = vset.pattern.permute.xlu1 %v908_v1  ;;  %v143_v59 = vrot.slane %v133_v49, %v1076_v39  ;;  %v147_v60 = vrot.slane %v137_v50, %v1076_v39  ;;  %v169_v61 = vrot.slane %v159_v51, %v1082_v43  ;;  %v173_v62 = vrot.slane %v163_v52, %v1082_v43 }
  0x1a   :  { %508 = vperm.xlu1 %869, %v454_v3  }
  0x1c   :  { %260 = vperm.xlu0 %874, %v835_v11  }
  0x1e   :  { %870 = vset.pattern.permute.xlu1 %v910_v4 }
  0x1f   :  { %534 = vperm.xlu1 %870, %v454_v3  }
  0x20   :  { %562 = vperm.xlu0 %874, %v559_v12  }
  0x23   :  { %871 = vset.pattern.permute.xlu1 %v911_v7 }
  0x24   :  { %271 = vperm.xlu1 %871, %v836_v13   ;;  %311 = vperm.xlu0 %874, %v838_v14  }
  0x28   :  { %291 = vperm.xlu1 %871, %v837_v15   ;;  %351 = vperm.xlu0 %874, %v840_v16  }
  0x2c   :  { %331 = vperm.xlu1 %871, %v839_v17   ;;  %369 = vperm.xlu0 %874, %v974_v5  }
  0x30   :  { %361 = vperm.xlu1 %871, %v358_v18   ;;  %616 = vperm.xlu0 %874, %v844_v19  }
  0x34   :  { %872 = vset.pattern.permute.xlu1 %v909_v2  ;;  %662 = vperm.xlu0 %874, %v847_v20  }
  0x35   :  { %383 = vperm.xlu1 %872, %v974_v5  }
  0x38   :  { %698 = vperm.xlu0 %874, %v849_v21  }
  0x39   :  { %875 = vset.pattern.permute.xlu1 %v911_v7 }
  0x3a   :  { %580 = vperm.xlu1 %875, %v577_v22  }
  0x3c   :  { %726 = vperm.xlu0 %874, %v723_v23  }
  0x3e   :  { %598 = vperm.xlu1 %875, %v843_v24   ;;  %v842_v24 = vld [vmem:[%s1505_s0 + $0x18] sm:$0xff] }
  0x3f   :  { %v518_v31 = vrot.slane %v842_v24, %v136_v40  ;;  %v488_v49 = vrot.slane %v842_v24, %v1065_v34  ;;  %v514_v51 = vrot.slane %v842_v24, %v1076_v39 }
  0x40   :  { %876 = vset.pattern.permute.xlu0 %v909_v2 }
  0x41   :  { %v528_v40 = vrot.slane %v518_v31, %v1076_v39 }
  0x42   :  { %634 = vperm.xlu1 %875, %v845_v25  }
  0x46   :  { %644 = vperm.xlu1 %875, %v846_v26   ;;  %v468_v26 = vrot.slane %v842_v24, %v86_v37 }
  0x4a   :  { %680 = vperm.xlu1 %875, %v848_v27  }
  0x4e   :  { %716 = vperm.xlu1 %875, %v850_v28   ;;  %v492_v28 = vrot.slane %v842_v24, %v110_v35 }
  0x50   :  { %v502_v35 = vrot.slane %v492_v28, %v1065_v34 }
  0x52   :  { %734 = vperm.xlu1 %875, %v1057_v29  }
  0x56   :  { %877 = vset.pattern.permute.xlu1 %v908_v1 }
  0x81   :  { %v102_v32 = vpop.permute.xlu0 %101  ;;  %v128_v33 = vpop.permute.xlu1 %127 }
  0x82   :  { %v122_v1 = vmul.f32 %v117_v55, %v102_v32  ;;  %v123_v2 = vmul.f32 %v121_v56, %v102_v32  ;;  %v148_v8 = vmul.f32 %v143_v59, %v128_v33  ;;  %v149_v9 = vmul.f32 %v147_v60, %v128_v33 }
  0x83   :  { %v478_v32 = vrot.slane %v468_v26, %v1069_v36  ;;  %v544_v33 = vrot.slane %v842_v24, %v162_v44  ;;  %v464_v44 = vrot.slane %v842_v24, %v1069_v36  ;;  %v540_v56 = vrot.slane %v842_v24, %v1082_v43  ;;  %v795_v26 = vld [vmem:[%s1511_s6] sm:$0xf] }
  0x84   :  { %v498_v60 = vrot.slane %v488_v49, %v1065_v34 }
  0x85   :  { %v1079_v41 = vpop.permute.xlu0 %482  ;;  %v554_v47 = vrot.slane %v544_v33, %v1082_v43 }
  0x86   :  { %v154_v42 = vpop.permute.xlu1 %153  ;;  %v504_v50 = vmul.f32 %v502_v35, %v1079_v41 }
  0x87   :  { %v174_v10 = vmul.f32 %v169_v61, %v154_v42  ;;  %v175_v11 = vmul.f32 %v173_v62, %v154_v42  ;;  %v524_v61 = vrot.slane %v514_v51, %v1076_v39 }
  0x8a   :  { %v1089_v53 = vpop.permute.xlu0 %399 }
  0x8c   :  { %v182_v54 = vpop.permute.xlu1 %181 }
  0x8f   :  { %v77_v0 = vpop.permute.xlu0 %76 }
  0x90   :  { %v1099_v63 = vpop.permute.xlu1 %240  ;;  %v98_v3 = vmul.f32 %v93_v57, %v77_v0  ;;  %v99_v6 = vmul.f32 %v97_v58, %v77_v0 }
  0x92   :  { %v124_v12 = vadd.f32 %v122_v1, %v98_v3  ;;  %v125_v13 = vadd.f32 %v123_v2, %v99_v6  ;;  %v550_v1 = vrot.slane %v540_v56, %v1082_v43  ;;  %v503_v6 = vmul.f32 %v498_v60, %v1079_v41 }
  0x93   :  { %v1112_v27 = vpop.permute.xlu0 %200 }
  0x94   :  { %v458_v14 = vpop.permute.xlu1 %457  ;;  %v150_v15 = vadd.f32 %v148_v8, %v124_v12  ;;  %v151_v16 = vadd.f32 %v149_v9, %v125_v13 }
  0x95   :  { %v480_v46 = vmul.f32 %v478_v32, %v458_v14 }
  0x96   :  { %v176_v17 = vadd.f32 %v174_v10, %v150_v15  ;;  %v177_v18 = vadd.f32 %v175_v11, %v151_v16 }
  0x97   :  { %v1131_v45 = vpop.permute.xlu0 %220  ;;  %v506_v55 = vadd.f32 %v504_v50, %v480_v46  ;;  %v1237_v50 = vand.u32 127, %v27_v30 }
  0x98   :  { %v184_v19 = vadd.f32 %v182_v54, %v176_v17  ;;  %v185_v20 = vadd.f32 %v182_v54, %v177_v18  ;;  %v474_v54 = vrot.slane %v464_v44, %v1069_v36 }
  0x99   :  { %v509_v21 = vpop.permute.xlu1 %508  ;;  %vm54_vm0 = vcmp.ge.s32.totalorder %v1237_v50, 16  ;;  %vm192_vm2 = vcmp.lt.s32.totalorder %v1237_v50, 17  ;;  %vm211_vm3 = vcmp.lt.s32.totalorder %v1237_v50, 16  ;;  %vm231_vm7 = vcmp.lt.s32.totalorder %v1237_v50, 15 }
  0x9a   :  { %v1101_v22 = vmax.f32 %v184_v19, 0.0  ;;  %v1103_v23 = vmax.f32 %v185_v20, 0.0  ;;  %v530_v52 = vmul.f32 %v528_v40, %v509_v21  ;;  %v479_v0 = vmul.f32 %v474_v54, %v458_v14 }
  0x9b   :  { %v1148_v59 = vpop.permute.xlu0 %260  ;;  %v529_v8 = vmul.f32 %v524_v61, %v509_v21  ;;  %v1240_v54 = vadd.s32 128, %v1237_v50  ;;  %vm251_vm10 = vcmp.lt.s32.totalorder %v1237_v50, 1  ;;  %vm1514_vm11 = vcmp.lt.s32.totalorder %v1237_v50, 127 }
  0x9c   :  { %190 = vrot.lane.b32.xlu1 %v1103_v23, %s912_s25  ;;  %188 = vrot.lane.b32.xlu0 %v1101_v22, %s912_s25  ;;  %v532_v62 = vadd.f32 %v530_v52, %v506_v55  ;;  %v505_v10 = vadd.f32 %v503_v6, %v479_v0  ;;  %v34_v55 = vand.u32 15, %v1237_v50  ;;  %vm1513_vm13 = vcmp.lt.s32.totalorder %v1237_v50, 113 }
  0x9d   :  { %v41_v60 = vand.u32 15, %v1240_v54  ;;  %vm65_vm12 = vcmp.lt.s32.totalorder %v1240_v54, 240  ;;  %vm322_vm15 = vcmp.lt.s32.totalorder %v1237_v50, 112 }
  0x9e   :  { %v535_v25 = vpop.permute.xlu1 %534  ;;  %v531_v14 = vadd.f32 %v529_v8, %v505_v10  ;;  %vm1245_vm1 = vcmp.ge.s32.totalorder %v34_v55, 1  ;;  %vm1251_vm4 = vcmp.lt.s32.totalorder %v34_v55, 15 }
  0x9f   :  { %v556_v57 = vmul.f32 %v554_v47, %v535_v25  ;;  %v563_v9 = vpop.permute.xlu0 %562  ;;  %v555_v11 = vmul.f32 %v550_v1, %v535_v25  ;;  %v430_v25 = vld [vmem:[%s1511_s6] sm:$0xf]  ;;  %vm1255_vm5 = vcmp.ge.s32.totalorder %v41_v60, 1  ;;  %vm1263_vm6 = vmand %vm54_vm0, %vm1245_vm1  ;;  %vm1278_vm8 = vcmp.lt.s32.totalorder %v41_v60, 15 }
  0xa0   :  { %207 = vrot.lane.b32.xlu1 %v1101_v22, %s913_s28  ;;  %229 = vrot.lane.b32.xlu0 %v1103_v23, %s914_s29  ;;  %vm1286_vm9 = vmand %vm54_vm0, %vm1251_vm4 }
  0xa1   :  { %v558_v2 = vadd.f32 %v556_v57, %v532_v62  ;;  %v557_v41 = vadd.f32 %v555_v11, %v531_v14  ;;  %vm1338_vm14 = vmand %vm65_vm12, %vm1255_vm5 }
  0xa3   :  { %v272_v38 = vpop.permute.xlu1 %271  ;;  %v566_v12 = vadd.f32 %v563_v9, %v558_v2  ;;  %v565_v17 = vadd.f32 %v563_v9, %v557_v41 }
  0xa4   :  { %v1120_v42 = vmul.f32 %v272_v38, %v1101_v22  ;;  %v1123_v37 = vmul.f32 %v272_v38, %v1103_v23  ;;  %209 = vrot.lane.b32.xlu1 %v1103_v23, %s913_s28  ;;  %247 = vrot.lane.b32.xlu0 %v1101_v22, %s915_s30 }
  0xa5   :  { %v568_v15 = vmax.f32 %v566_v12, 0.0  ;;  %v567_v19 = vmax.f32 %v565_v17, 0.0 }
  0xa7   :  { %v1135_v48 = vpop.permute.xlu1 %291 }
  0xa8   :  { %227 = vrot.lane.b32.xlu1 %v1101_v22, %s914_s29  ;;  %280 = vrot.lane.b32.xlu0 %v1103_v23, %s916_s8 }
  0xab   :  { %v1146_v58 = vpop.permute.xlu1 %331 }
  0xac   :  { %249 = vrot.lane.b32.xlu1 %v1103_v23, %s915_s30  ;;  %298 = vrot.lane.b32.xlu0 %v1101_v22, %s917_s1 }
  0xaf   :  { %v1157_v3 = vpop.permute.xlu1 %361 }
  0xb0   :  { %278 = vrot.lane.b32.xlu1 %v1101_v22, %s916_s8  ;;  %320 = vrot.lane.b32.xlu0 %v1103_v23, %s918_s9 }
  0xb4   :  { %v1164_v13 = vpop.permute.xlu1 %383  ;;  %300 = vrot.lane.b32.xlu1 %v1103_v23, %s917_s1  ;;  %338 = vrot.lane.b32.xlu0 %v1101_v22, %s919_s10 }
  0xb8   :  { %318 = vrot.lane.b32.xlu1 %v1101_v22, %s918_s9  ;;  %571 = vrot.lane.b32.xlu0 %v568_v15, %s912_s25 }
  0xb9   :  { %v1169_v16 = vpop.permute.xlu1 %580 }
  0xbc   :  { %340 = vrot.lane.b32.xlu1 %v1103_v23, %s919_s10  ;;  %589 = vrot.lane.b32.xlu0 %v568_v15, %s913_s28  ;;  %v1203_v23 = vpop.permute.xlu0 %311 }
  0xbd   :  { %v1174_v18 = vpop.permute.xlu1 %598 }
  0xc0   :  { %569 = vrot.lane.b32.xlu1 %v567_v19, %s912_s25  ;;  %605 = vrot.lane.b32.xlu0 %v567_v19, %s914_s29 }
  0xc1   :  { %v1178_v20 = vpop.permute.xlu1 %634 }
  0xc4   :  { %587 = vrot.lane.b32.xlu1 %v567_v19, %s913_s28  ;;  %625 = vrot.lane.b32.xlu0 %v568_v15, %s915_s30 }
  0xc5   :  { %v645_v21 = vpop.permute.xlu1 %644 }
  0xc6   :  { %v1184_v22 = vmul.f32 %v645_v21, %v567_v19  ;;  %v1186_v24 = vmul.f32 %v645_v21, %v568_v15 }
  0xc8   :  { %607 = vrot.lane.b32.xlu1 %v568_v15, %s914_s29  ;;  %653 = vrot.lane.b32.xlu0 %v568_v15, %s916_s8 }
  0xc9   :  { %v1226_v40 = vpop.permute.xlu1 %680 }
  0xcc   :  { %623 = vrot.lane.b32.xlu1 %v567_v19, %s915_s30  ;;  %669 = vrot.lane.b32.xlu0 %v567_v19, %s917_s1 }
  0xcd   :  { %v1230_v46 = vpop.permute.xlu1 %716 }
  0xd0   :  { %651 = vrot.lane.b32.xlu1 %v567_v19, %s916_s8  ;;  %687 = vrot.lane.b32.xlu0 %v567_v19, %s918_s9 }
  0xd1   :  { %v1234_v49 = vpop.permute.xlu1 %734 }
  0xd4   :  { %671 = vrot.lane.b32.xlu1 %v568_v15, %s917_s1  ;;  %707 = vrot.lane.b32.xlu0 %v568_v15, %s919_s10 }
  0xd8   :  { %689 = vrot.lane.b32.xlu1 %v568_v15, %s918_s9  ;;  %748 = vperm.xlu0 %876, %v1057_v29  }
  0xdc   :  { %705 = vrot.lane.b32.xlu1 %v567_v19, %s919_s10  ;;  %879 = vset.pattern.permute.xlu0 %v910_v4 }
  0xdd   :  { %780 = vperm.xlu0 %879, %v1057_v29  }
  0xe0   :  { %764 = vperm.xlu1 %877, %v1057_v29   ;;  %v1212_v29 = vpop.permute.xlu0 %351 }
  0xe1   :  { %881 = vset.pattern.permute.xlu0 %v911_v7 }
  0xe4   :  { %878 = vset.pattern.permute.xlu1 %v910_v4  ;;  %v1214_v28 = vpop.permute.xlu0 %369  ;;  %v70_v4 = vld [vmem:[%s1505_s0] sm:$0xff] }
  0xe5   :  { %415 = vperm.xlu1 %878, %v974_v5   ;;  %v841_v5 = vld [vmem:[%s1505_s0 + $0x10] sm:$0xff]  ;;  %v441_v31 = vcombine.high %v70_v4, %v70_v4  ;;  %s920_s0 = smov [#allocation2]  }
  0xe6   :  { %s821_s6 = sshll.u32 %s920_s0, 4  ;;  %s822_s6 = int_to_ptr.vmem [resolvable:$true] %s821_s6 }
  0xe7   :  { %v444_v32 = vcombine.low %v70_v4, %v441_v31  ;;  %s884_s19 = scalar_lea.vmem %s822_s6, 512  ;;  %p889_p1 = scmp.lt.s32.totalorder %s822_s6, %s822_s6 }
  0xe8   :  { %v1222_v38 = vpop.permute.xlu0 %616  ;;  %p885_p0 = scmp.ne.s32.totalorder %s822_s6, %s884_s19  ;;  %p890_p2 = scmp.lt.s32.totalorder %s884_s19, %s884_s19 }
  0xe9   :  { %880 = vset.pattern.permute.xlu1 %v911_v7  ;;  %v806_v7 = vcombine.high %v841_v5, %v841_v5  ;;  %448 = vst [vmem:[#allocation2] sm:$0xff] %v444_v32 }
  0xea   :  { %433 = vperm.xlu1 %880, %v430_v25   ;;  %p891_p3 = por %p890_p2, %p889_p1 }
  0xeb   :  { %v809_v33 = vcombine.low %v841_v5, %v806_v7 }
  0xec   :  { %v1224_v35 = vpop.permute.xlu0 %662  ;;  %p892_p4 = pnand %p891_p3, %p885_p0 }
  0xed   :  { %814 = vst [vmem:[#allocation2 + $0x10] sm:$0xff] %v809_v33 }
  0xee   :  { %798 = vperm.xlu1 %880, %v795_v26  }
  0xf0   :  { %v1228_v44 = vpop.permute.xlu0 %698 }
  0xf4   :  { %v1232_v47 = vpop.permute.xlu0 %726 }
 0x10e   :  { %v191_v51 = vpop.permute.xlu1 %190  ;;  %v189_v52 = vpop.permute.xlu0 %188 }
 0x10f   :  { %v193_v6 = vsel %vm192_vm2, %v189_v52, %v191_v51  ;;  %v194_v8 = vsel %vm192_vm2, %v191_v51, %v189_v52 }
 0x110   :  { %v195_v41 = vsel %vm1263_vm6, %v194_v8, 0.0  ;;  %v196_v15 = vsel %vm1255_vm5, %v193_v6, 0.0 }
 0x111   :  { %v203_v7 = vmul.f32 %v1112_v27, %v195_v41  ;;  %v204_v32 = vmul.f32 %v1112_v27, %v196_v15 }
 0x112   :  { %v208_v56 = vpop.permute.xlu1 %207  ;;  %v230_v57 = vpop.permute.xlu0 %229 }
 0x116   :  { %v210_v30 = vpop.permute.xlu1 %209  ;;  %v248_v62 = vpop.permute.xlu0 %247 }
 0x117   :  { %v213_v9 = vsel %vm211_vm3, %v210_v30, %v208_v56  ;;  %v212_v10 = vsel %vm211_vm3, %v208_v56, %v210_v30 }
 0x118   :  { %v214_v11 = vsel %vm54_vm0, %v213_v9, 0.0  ;;  %v224_v25 = vmul.f32 %v1131_v45, %v212_v10 }
 0x119   :  { %v223_v21 = vmul.f32 %v1131_v45, %v214_v11 }
 0x11a   :  { %v228_v17 = vpop.permute.xlu1 %227  ;;  %v281_v19 = vpop.permute.xlu0 %280  ;;  %v226_v56 = vadd.f32 %v224_v25, %v204_v32 }
 0x11b   :  { %v232_v26 = vsel %vm231_vm7, %v228_v17, %v230_v57  ;;  %v233_v4 = vsel %vm231_vm7, %v230_v57, %v228_v17  ;;  %v225_v55 = vadd.f32 %v223_v21, %v203_v7 }
 0x11c   :  { %v234_v5 = vsel %vm1286_vm9, %v233_v4, 0.0  ;;  %v235_v31 = vsel %vm1278_vm8, %v232_v26, 0.0 }
 0x11d   :  { %v243_v45 = vmul.f32 %v1099_v63, %v234_v5  ;;  %v244_v33 = vmul.f32 %v1099_v63, %v235_v31 }
 0x11e   :  { %v250_v51 = vpop.permute.xlu1 %249  ;;  %v299_v52 = vpop.permute.xlu0 %298 }
 0x11f   :  { %v252_v57 = vsel %vm251_vm10, %v248_v62, %v250_v51  ;;  %v253_v60 = vsel %vm251_vm10, %v250_v51, %v248_v62  ;;  %v245_v6 = vadd.f32 %v243_v45, %v225_v55  ;;  %v246_v63 = vadd.f32 %v244_v33, %v226_v56 }
 0x120   :  { %v254_v30 = vsel %vm1245_vm1, %v253_v60, 0.0  ;;  %v255_v27 = vsel %vm1255_vm5, %v252_v57, 0.0 }
 0x121   :  { %v263_v8 = vmul.f32 %v1148_v59, %v254_v30  ;;  %v264_v9 = vmul.f32 %v1148_v59, %v255_v27 }
 0x122   :  { %v279_v10 = vpop.permute.xlu1 %278  ;;  %v321_v11 = vpop.permute.xlu0 %320 }
 0x123   :  { %v265_v41 = vadd.f32 %v263_v8, %v245_v6  ;;  %v266_v62 = vadd.f32 %v264_v9, %v246_v63  ;;  %v283_v15 = vsel %vm1514_vm11, %v279_v10, %v281_v19  ;;  %v284_v17 = vsel %vm1514_vm11, %v281_v19, %v279_v10  ;;  %vm1366_vm11 = vmand %vm65_vm12, %vm1278_vm8 }
 0x124   :  { %v285_v21 = vsel %vm1251_vm4, %v283_v15, 0.0  ;;  %v286_v25 = vsel %vm1278_vm8, %v284_v17, 0.0 }
 0x125   :  { %v276_v59 = vadd.f32 %v1120_v42, %v265_v41  ;;  %v277_v26 = vadd.f32 %v1123_v37, %v266_v62  ;;  %v294_v4 = vmul.f32 %v1135_v48, %v285_v21  ;;  %v295_v5 = vmul.f32 %v1135_v48, %v286_v25 }
 0x126   :  { %v301_v31 = vpop.permute.xlu1 %300  ;;  %v339_v7 = vpop.permute.xlu0 %338 }
 0x127   :  { %v296_v32 = vadd.f32 %v294_v4, %v276_v59  ;;  %v297_v45 = vadd.f32 %v295_v5, %v277_v26  ;;  %v303_v42 = vsel %vm1513_vm13, %v299_v52, %v301_v31  ;;  %v304_v37 = vsel %vm1513_vm13, %v301_v31, %v299_v52 }
 0x128   :  { %v305_v48 = vsel %vm1245_vm1, %v303_v42, 0.0  ;;  %v306_v33 = vsel %vm1338_vm14, %v304_v37, 0.0  ;;  %vm342_vm13 = vcmp.lt.s32.totalorder %v1237_v50, 111 }
 0x129   :  { %v314_v51 = vmul.f32 %v1203_v23, %v305_v48  ;;  %v315_v55 = vmul.f32 %v1203_v23, %v306_v33 }
 0x12a   :  { %v319_v56 = vpop.permute.xlu1 %318  ;;  %v572_v57 = vpop.permute.xlu0 %571 }
 0x12b   :  { %v316_v60 = vadd.f32 %v314_v51, %v296_v32  ;;  %v317_v30 = vadd.f32 %v315_v55, %v297_v45  ;;  %v323_v27 = vsel %vm322_vm15, %v319_v56, %v321_v11  ;;  %v324_v52 = vsel %vm322_vm15, %v321_v11, %v319_v56 }
 0x12c   :  { %v326_v6 = vsel %vm65_vm12, %v324_v52, 0.0  ;;  %v334_v63 = vmul.f32 %v1146_v58, %v323_v27 }
 0x12d   :  { %v335_v8 = vmul.f32 %v1146_v58, %v326_v6 }
 0x12e   :  { %v336_v9 = vadd.f32 %v334_v63, %v316_v60  ;;  %v341_v10 = vpop.permute.xlu1 %340  ;;  %v590_v11 = vpop.permute.xlu0 %589 }
 0x12f   :  { %v337_v41 = vadd.f32 %v335_v8, %v317_v30  ;;  %v343_v62 = vsel %vm342_vm13, %v339_v7, %v341_v10  ;;  %v344_v15 = vsel %vm342_vm13, %v341_v10, %v339_v7 }
 0x130   :  { %v345_v58 = vsel %vm1251_vm4, %v343_v62, 0.0  ;;  %v346_v17 = vsel %vm1366_vm11, %v344_v15, 0.0 }
 0x131   :  { %v354_v21 = vmul.f32 %v1212_v29, %v345_v58  ;;  %v355_v25 = vmul.f32 %v1212_v29, %v346_v17 }
 0x132   :  { %v570_v59 = vpop.permute.xlu1 %569  ;;  %v606_v26 = vpop.permute.xlu0 %605 }
 0x133   :  { %v1380_v4 = vadd.f32 %v354_v21, %v336_v9  ;;  %v1382_v5 = vadd.f32 %v355_v25, %v337_v41  ;;  %v573_v7 = vsel %vm192_vm2, %v570_v59, %v572_v57  ;;  %v574_v45 = vsel %vm192_vm2, %v572_v57, %v570_v59 }
 0x134   :  { %v575_v48 = vsel %vm1263_vm6, %v574_v45, 0.0  ;;  %v576_v33 = vsel %vm1255_vm5, %v573_v7, 0.0 }
 0x135   :  { %v583_v52 = vmul.f32 %v1169_v16, %v575_v48  ;;  %v584_v6 = vmul.f32 %v1169_v16, %v576_v33 }
 0x136   :  { %v588_v31 = vpop.permute.xlu1 %587  ;;  %v626_v32 = vpop.permute.xlu0 %625 }
 0x137   :  { %v592_v42 = vsel %vm211_vm3, %v590_v11, %v588_v31  ;;  %v591_v29 = vsel %vm211_vm3, %v588_v31, %v590_v11  ;;  %vm1533_vm3 = vcmp.lt.s32.totalorder %v1237_v50, 113 }
 0x138   :  { %v593_v37 = vsel %vm54_vm0, %v592_v42, 0.0  ;;  %v602_v56 = vmul.f32 %v1174_v18, %v591_v29  ;;  %vm1531_vm0 = vcmp.lt.s32.totalorder %v1237_v50, 127 }
 0x139   :  { %v601_v55 = vmul.f32 %v1174_v18, %v593_v37  ;;  %vm1532_vm2 = vmmov %vm1531_vm0 }
 0x13a   :  { %v608_v51 = vpop.permute.xlu1 %607  ;;  %v654_v27 = vpop.permute.xlu0 %653  ;;  %v604_v10 = vadd.f32 %v602_v56, %v584_v6 }
 0x13b   :  { %v609_v57 = vsel %vm231_vm7, %v606_v26, %v608_v51  ;;  %v610_v60 = vsel %vm231_vm7, %v608_v51, %v606_v26  ;;  %v603_v9 = vadd.f32 %v601_v55, %v583_v52 }
 0x13c   :  { %v611_v30 = vsel %vm1286_vm9, %v610_v60, 0.0  ;;  %v612_v2 = vsel %vm1278_vm8, %v609_v57, 0.0 }
 0x13d   :  { %v619_v63 = vmul.f32 %v1222_v38, %v611_v30  ;;  %v620_v18 = vmul.f32 %v1222_v38, %v612_v2 }
 0x13e   :  { %v624_v8 = vpop.permute.xlu1 %623  ;;  %v670_v17 = vpop.permute.xlu0 %669 }
 0x13f   :  { %v627_v11 = vsel %vm251_vm10, %v624_v8, %v626_v32  ;;  %v628_v14 = vsel %vm251_vm10, %v626_v32, %v624_v8  ;;  %v621_v16 = vadd.f32 %v619_v63, %v603_v9  ;;  %v622_v15 = vadd.f32 %v620_v18, %v604_v10 }
 0x140   :  { %v629_v41 = vsel %vm1245_vm1, %v628_v14, 0.0  ;;  %v630_v62 = vsel %vm1255_vm5, %v627_v11, 0.0  ;;  %vm1534_vm5 = vmmov %vm1533_vm3 }
 0x141   :  { %v637_v58 = vmul.f32 %v1178_v20, %v629_v41  ;;  %v638_v38 = vmul.f32 %v1178_v20, %v630_v62  ;;  %v364_v41 = vadd.f32 %v1157_v3, %v1380_v4  ;;  %v365_v62 = vadd.f32 %v1157_v3, %v1382_v5 }
 0x142   :  { %v652_v21 = vpop.permute.xlu1 %651  ;;  %v688_v55 = vpop.permute.xlu0 %687 }
 0x143   :  { %v639_v25 = vadd.f32 %v637_v58, %v621_v16  ;;  %v640_v59 = vadd.f32 %v638_v38, %v622_v15  ;;  %v655_v26 = vsel %vm1531_vm0, %v652_v21, %v654_v27  ;;  %v656_v31 = vsel %vm1532_vm2, %v654_v27, %v652_v21 }
 0x144   :  { %v657_v1 = vsel %vm1251_vm4, %v655_v26, 0.0  ;;  %v658_v32 = vsel %vm1278_vm8, %v656_v31, 0.0  ;;  %v375_v16 = vrot.slane %v364_v41, %v1069_v36  ;;  %v379_v23 = vrot.slane %v365_v62, %v1069_v36 }
 0x145   :  { %v649_v7 = vadd.f32 %v1184_v22, %v639_v25  ;;  %v650_v20 = vadd.f32 %v1186_v24, %v640_v59  ;;  %v665_v45 = vmul.f32 %v1224_v35, %v657_v1  ;;  %v666_v42 = vmul.f32 %v1224_v35, %v658_v32 }
 0x146   :  { %v672_v29 = vpop.permute.xlu1 %671  ;;  %v708_v52 = vpop.permute.xlu0 %707  ;;  %v389_v15 = vrot.slane %v364_v41, %v1065_v34  ;;  %v380_v58 = vmul.f32 %v375_v16, %v1214_v28  ;;  %v381_v38 = vmul.f32 %v379_v23, %v1214_v28  ;;  %v405_v26 = vrot.slane %v364_v41, %v1076_v39 }
 0x147   :  { %v667_v37 = vadd.f32 %v665_v45, %v649_v7  ;;  %v668_v48 = vadd.f32 %v666_v42, %v650_v20  ;;  %v673_v33 = vsel %vm1533_vm3, %v670_v17, %v672_v29  ;;  %v674_v51 = vsel %vm1534_vm5, %v672_v29, %v670_v17 }
 0x148   :  { %v675_v12 = vsel %vm1245_vm1, %v673_v33, 0.0  ;;  %v676_v22 = vsel %vm1338_vm14, %v674_v51, 0.0  ;;  %v394_v4 = vmul.f32 %v389_v15, %v1164_v13  ;;  %v409_v31 = vrot.slane %v365_v62, %v1076_v39 }
 0x149   :  { %v683_v24 = vmul.f32 %v1226_v40, %v675_v12  ;;  %v684_v35 = vmul.f32 %v1226_v40, %v676_v22  ;;  %v425_v42 = vrot.slane %v365_v62, %v1082_v43  ;;  %v410_v29 = vmul.f32 %v405_v26, %v1089_v53 }
 0x14a   :  { %v690_v56 = vpop.permute.xlu1 %689  ;;  %v396_v32 = vadd.f32 %v394_v4, %v380_v58 }
 0x14b   :  { %v685_v57 = vadd.f32 %v683_v24, %v667_v37  ;;  %v686_v60 = vadd.f32 %v684_v35, %v668_v48  ;;  %v691_v30 = vsel %vm322_vm15, %v688_v55, %v690_v56  ;;  %v692_v2 = vsel %vm322_vm15, %v690_v56, %v688_v55 }
 0x14c   :  { %v694_v61 = vsel %vm65_vm12, %v692_v2, 0.0  ;;  %v701_v27 = vmul.f32 %v1228_v44, %v691_v30  ;;  %v411_v37 = vmul.f32 %v409_v31, %v1089_v53  ;;  %v412_v12 = vadd.f32 %v410_v29, %v396_v32 }
 0x14d   :  { %v702_v19 = vmul.f32 %v1228_v44, %v694_v61 }
 0x14e   :  { %v703_v6 = vadd.f32 %v701_v27, %v685_v57  ;;  %v706_v63 = vpop.permute.xlu1 %705 }
 0x14f   :  { %v704_v40 = vadd.f32 %v702_v19, %v686_v60  ;;  %v709_v18 = vsel %vm342_vm13, %v706_v63, %v708_v52  ;;  %v710_v8 = vsel %vm342_vm13, %v708_v52, %v706_v63 }
 0x150   :  { %v711_v9 = vsel %vm1251_vm4, %v709_v18, 0.0  ;;  %v712_v54 = vsel %vm1366_vm11, %v710_v8, 0.0 }
 0x151   :  { %v719_v10 = vmul.f32 %v1230_v46, %v711_v9  ;;  %v720_v44 = vmul.f32 %v1230_v46, %v712_v54  ;;  %v393_v46 = vrot.slane %v365_v62, %v1065_v34 }
 0x153   :  { %v721_v11 = vadd.f32 %v719_v10, %v703_v6  ;;  %v722_v14 = vadd.f32 %v720_v44, %v704_v40  ;;  %v395_v3 = vmul.f32 %v393_v46, %v1164_v13 }
 0x155   :  { %v729_v50 = vadd.f32 %v1232_v47, %v721_v11  ;;  %v730_v0 = vadd.f32 %v1232_v47, %v722_v14  ;;  %v397_v13 = vadd.f32 %v395_v3, %v381_v38 }
 0x157   :  { %v740_v5 = vrot.slane %v729_v50, %v1069_v36  ;;  %v744_v47 = vrot.slane %v730_v0, %v1069_v36  ;;  %v754_v17 = vrot.slane %v729_v50, %v1065_v34  ;;  %v758_v21 = vrot.slane %v730_v0, %v1065_v34  ;;  %v749_v25 = vpop.permute.xlu0 %748 }
 0x158   :  { %v770_v28 = vrot.slane %v729_v50, %v1076_v39  ;;  %v774_v1 = vrot.slane %v730_v0, %v1076_v39  ;;  %v421_v34 = vrot.slane %v364_v41, %v1082_v43  ;;  %v413_v22 = vadd.f32 %v411_v37, %v397_v13 }
 0x159   :  { %v745_v7 = vmul.f32 %v740_v5, %v1234_v49  ;;  %v746_v36 = vmul.f32 %v744_v47, %v1234_v49  ;;  %v759_v20 = vmul.f32 %v754_v17, %v749_v25  ;;  %v760_v45 = vmul.f32 %v758_v21, %v749_v25 }
 0x15a   :  { %v786_v60 = vrot.slane %v729_v50, %v1082_v43  ;;  %v790_v30 = vrot.slane %v730_v0, %v1082_v43 }
 0x15b   :  { %v761_v24 = vadd.f32 %v759_v20, %v745_v7  ;;  %v762_v35 = vadd.f32 %v760_v45, %v746_v36 }
 0x15c   :  { %v781_v49 = vpop.permute.xlu0 %780 }
 0x15d   :  { %v791_v53 = vmul.f32 %v786_v60, %v781_v49  ;;  %v792_v19 = vmul.f32 %v790_v30, %v781_v49 }
 0x15f   :  { %v765_v59 = vpop.permute.xlu1 %764 }
 0x160   :  { %v775_v48 = vmul.f32 %v770_v28, %v765_v59  ;;  %v776_v33 = vmul.f32 %v774_v1, %v765_v59 }
 0x162   :  { %v777_v2 = vadd.f32 %v775_v48, %v761_v24  ;;  %v778_v61 = vadd.f32 %v776_v33, %v762_v35 }
 0x164   :  { %v416_v51 = vpop.permute.xlu1 %415  ;;  %v793_v18 = vadd.f32 %v791_v53, %v777_v2  ;;  %v794_v8 = vadd.f32 %v792_v19, %v778_v61 }
 0x165   :  { %v426_v39 = vmul.f32 %v421_v34, %v416_v51  ;;  %v427_v55 = vmul.f32 %v425_v42, %v416_v51 }
 0x167   :  { %v428_v56 = vadd.f32 %v426_v39, %v412_v12  ;;  %v429_v57 = vadd.f32 %v427_v55, %v413_v22 }
 0x169   :  { %v434_v27 = vpop.permute.xlu1 %433 }
 0x16a   :  { %v436_v52 = vadd.f32 %v434_v27, %v428_v56  ;;  %v437_v6 = vadd.f32 %v434_v27, %v429_v57 }
 0x16c   :  { %v438_v63 = vmax.f32 %v436_v52, 0.0  ;;  %v439_v40 = vmax.f32 %v437_v6, 0.0 }
 0x16d   :  { %v799_v9 = vpop.permute.xlu1 %798 }
 0x16e   :  { %v445_v54 = vcombine.low %v438_v63, %v439_v40  ;;  %v801_v10 = vadd.f32 %v799_v9, %v793_v18  ;;  %v802_v44 = vadd.f32 %v799_v9, %v794_v8 }
 0x170   :  { %449 = vst [vmem:[#allocation2 + $0x8] sm:$0xff] %v445_v54  ;;  %v803_v11 = vmax.f32 %v801_v10, 0.0  ;;  %v804_v43 = vmax.f32 %v802_v44, 0.0 }
 0x172   :  { %v810_v14 = vcombine.low %v803_v11, %v804_v43 }
 0x174   :  { %815 = vst [vmem:[#allocation2 + $0x18] sm:$0xff] %v810_v14 }
 0x175   :  { %895 = shalt.err (!%p892_p4)
}
 0x176   :  { %s896_s4 = scalar_lea.hbm %s1512_s7, 512 }
 0x177   :  { %p897_p5 = scmp.ne.s32.totalorder %s1512_s7, %s896_s4  ;;  %p900_p6 = scmp.lt.u32.totalorder %s896_s4, %s1512_s7 }
 0x179   :  { %p902_p7 = pnand %p900_p6, %p897_p5 }
 0x17b   :  { %905 = shalt.err (!%p902_p7)
}
 0x17c   :  { %s921_s3 = smov 256  }
 0x17d   :  { %827 = dma.vmem_to_hbm [thread:$0]  %s822_s6, 512, %s1512_s7, [#allocation3], %s921_s3, %s921_s3, %s913_s28  }
 0x17e   :  { %906 = dma.done.wait [#allocation3], 512  }
 0x17f   :  { %907 = vsyncadd [#allocation3], 4294966784 }
 0x180   :  { %831 = vsyncpa [#allocation3], 1 }

</bundles_post_ra>
